<compile_context>
chip_gen: v5e
topology: v5e:2x2
jax: 0.10.0
libtpu: 0.0.40
codegen_flags: <defaults>
</compile_context>

<pallas_src>
import functools

import jax
import jax.numpy as jnp
from jax import lax
from jax.experimental import pallas as pl
from jax.experimental.pallas import tpu as pltpu

EPS = 1e-12          # F.normalize eps
NEG_SLOPE = 0.01     # nn.LeakyReLU default negative_slope


def _round_up(x, m):
    return ((x + m - 1) // m) * m


def _pow2_tile(n, cap):
    t = 128
    while t * 2 <= min(n, cap):
        t *= 2
    return t


# ----------------------------- in-kernel helpers -----------------------------

def _l2_normalize(x):
    # F.normalize(x, p=2, dim=-1): x / max(||x||, eps) == x * rsqrt(max(sumsq, eps^2))
    # rsqrt goes to the (otherwise idle) EUP slot.
    ss = jnp.sum(x * x, axis=-1, keepdims=True)
    return x * lax.rsqrt(jnp.maximum(ss, EPS * EPS))


def _leaky_relu(x):
    return jnp.where(x >= 0, x, NEG_SLOPE * x)


def _log_sigmoid(x):
    # stable: logsigmoid(x) = min(x, 0) - log1p(exp(-|x|))
    return jnp.minimum(x, 0.0) - jnp.log1p(jnp.exp(-jnp.abs(x)))


# ------------------------------ Pallas kernels -------------------------------

def _bi_interaction_kernel(a_ref, ek_ref, ei_ref, w1_ref, b1_ref, w2_ref, b2_ref,
                           out_ref, norm_ref, acc_ref, *, resident_e):
    """Aggregator('bi-interaction') layer + the following F.normalize, tiled.

    Grid = (rows N/tm "parallel", reduction N/tk "arbitrary").
      a_ref  : (tm, tk)  bf16  attention adjacency tile A[dst, src]
      ek_ref : (tk, Din) or (Np, Din) bf16  node embeddings (reduction operand;
               full array when resident_e, sliced in-kernel with pl.ds)
      ei_ref : (tm, Din) bf16  node embeddings (ego rows for the epilogue)
      w1/w2  : (Din, Dout) bf16 (transposed nn.Linear weights), b1/b2: (1, Dout) f32
      out    : (tm, Dout) bf16 un-normalized output (next layer's ego_embed)
      norm   : (tm, Dout) bf16 L2-normalized output (appended to all_embed)
      acc_ref: (tm, Din)  f32 accumulator for N_h = A @ E
    """
    k = pl.program_id(1)

    @pl.when(k == 0)
    def _():
        acc_ref[...] = jnp.zeros_like(acc_ref)

    tk = a_ref.shape[1]
    if resident_e:
        # E is fully VMEM-resident (constant index_map -> DMA'd once); slice the
        # current reduction chunk in-kernel (128-aligned sublane offset).
        off = pl.multiple_of(k * tk, 128)
        ek = ek_ref[pl.ds(off, tk), :]
    else:
        ek = ek_ref[...]

    # message passing: N_h[dst] += sum_src A[dst, src] * E[src]   (bf16 MXU, f32 acc)
    acc_ref[...] += jnp.dot(a_ref[...], ek, preferred_element_type=jnp.float32)

    @pl.when(k == pl.num_programs(1) - 1)
    def _():
        E = ei_ref[...].astype(jnp.float32)   # ego rows, upcast once in the epilogue
        Nh = acc_ref[...]
        s = (E + Nh).astype(jnp.bfloat16)     # sum-interaction
        p = (E * Nh).astype(jnp.bfloat16)     # bi (element-wise) interaction
        o1 = _leaky_relu(
            jnp.dot(s, w1_ref[...], preferred_element_type=jnp.float32) + b1_ref[...])
        o2 = _leaky_relu(
            jnp.dot(p, w2_ref[...], preferred_element_type=jnp.float32) + b2_ref[...])
        out = o1 + o2                         # message_dropout is identity in eval mode
        out_ref[...] = out.astype(out_ref.dtype)
        norm_ref[...] = _l2_normalize(out).astype(norm_ref.dtype)


def _score_kernel(u_ref, it_ref, o_ref):
    """cf_score tile = user_embed_tile @ item_embed_T_tile (bf16 in, f32 accumulate)."""
    o_ref[...] = jnp.dot(u_ref[...], it_ref[...],
                         preferred_element_type=jnp.float32)


def _kg_loss_kernel(h_e_ref, h_p_ref, pt_e_ref, pt_p_ref, nt_e_ref, nt_p_ref,
                    rp_ref, re_ref, loss_ref, acc_ref, *, lam, batch):
    """TransD KG loss (calc_kg_loss), tiled over batch, SMEM scalar accumulator."""
    b = pl.program_id(0)
    tb = h_e_ref.shape[0]

    @pl.when(b == 0)
    def _():
        acc_ref[0] = 0.0

    rp = rp_ref[...]

    def transd(e, p):
        d = jnp.sum(e * p, axis=-1, keepdims=True)
        return _l2_normalize(e + d * rp)

    # TransD projection + the exact second F.normalize of the reference code
    Mh = _l2_normalize(transd(h_e_ref[...], h_p_ref[...]))
    re = _l2_normalize(re_ref[...])
    Mp = _l2_normalize(transd(pt_e_ref[...], pt_p_ref[...]))
    Mn = _l2_normalize(transd(nt_e_ref[...], nt_p_ref[...]))

    pos = jnp.sum((Mh + re - Mp) ** 2, axis=1, keepdims=True)   # (tb, 1)
    neg = jnp.sum((Mh + re - Mn) ** 2, axis=1, keepdims=True)   # (tb, 1)

    row = b * tb + lax.broadcasted_iota(jnp.int32, (tb, 1), 0)
    valid = (row < batch).astype(jnp.float32)                   # mask padded rows

    kg_rows = -_log_sigmoid(neg - pos)
    l2_rows = 0.5 * jnp.sum(Mh * Mh + re * re + Mp * Mp + Mn * Mn,
                            axis=1, keepdims=True)
    acc_ref[0] += jnp.sum(valid * (kg_rows + lam * l2_rows))

    @pl.when(b == pl.num_programs(0) - 1)
    def _():
        loss_ref[...] = jnp.full((1, 1), acc_ref[0] / batch, jnp.float32)


def _cf_loss_kernel(u_ref, p_ref, n_ref, loss_ref, acc_ref, *, lam, batch):
    """BPR CF loss (calc_cf_loss), tiled over batch, SMEM scalar accumulator."""
    b = pl.program_id(0)
    tb = u_ref.shape[0]

    @pl.when(b == 0)
    def _():
        acc_ref[0] = 0.0

    u, p, n = u_ref[...], p_ref[...], n_ref[...]
    pos = jnp.sum(u * p, axis=1, keepdims=True)
    neg = jnp.sum(u * n, axis=1, keepdims=True)

    row = b * tb + lax.broadcasted_iota(jnp.int32, (tb, 1), 0)
    valid = (row < batch).astype(jnp.float32)

    cf_rows = -_log_sigmoid(pos - neg)
    l2_rows = 0.5 * jnp.sum(u * u + p * p + n * n, axis=1, keepdims=True)
    acc_ref[0] += jnp.sum(valid * (cf_rows + lam * l2_rows))

    @pl.when(b == pl.num_programs(0) - 1)
    def _():
        loss_ref[...] = jnp.full((1, 1), acc_ref[0] / batch, jnp.float32)


# ------------------------------ kernel wrappers -------------------------------

def _agg_tiles(N):
    """Row/reduction tile sizes for the aggregator.

    Big tiles (tm<=1024, tk<=2048) minimize per-step overhead and E re-streaming;
    the footprint stays well under 48 MiB even on v7x's 64 MiB VMEM.  If the graph
    only yields one row tile, halve tm so the 'parallel' row axis can still feed
    both TensorCores on v7x.
    """
    Np = _round_up(max(N, 1), 128)
    tm = _pow2_tile(Np, 1024)         # 128-aligned row tile (MXU friendly)
    tk = _pow2_tile(Np, 2048)         # reduction tile (lanes of A)
    Np = _round_up(Np, tk)            # tm | tk (both pow2, tm <= tk) so tm | Np too
    if Np // tm < 2 and tm > 128:     # v7x megacore: prefer >= 2 row tiles
        tm //= 2
    return Np, tm, tk


def bi_interaction_layer(A_bf, E_bf, W1p, b1p, W2p, b2p, tm, tk):
    Np = A_bf.shape[0]
    Dinp = E_bf.shape[1]
    Doutp = W1p.shape[1]
    grid = (Np // tm, Np // tk)

    # Make the E reduction operand fully VMEM-resident when small enough: this kills
    # the (Np/tm)-fold re-streaming of E across row tiles (biggest win on v5e/v6e's
    # 128 MiB VMEM).  Threshold is conservative so the total fits v7x's 64 MiB part
    # even if the resident block is double-buffered.
    resident_e = (Np * Dinp * 2) <= 12 * 1024 * 1024
    if resident_e:
        ek_spec = pl.BlockSpec((Np, Dinp), lambda i, k: (0, 0))
        ek_bytes = 2 * Np * Dinp * 2
    else:
        ek_spec = pl.BlockSpec((tk, Dinp), lambda i, k: (k, 0))
        ek_bytes = 2 * tk * Dinp * 2

    # conservative VMEM budget (double-buffered pipeline); capped at 48 MiB for v7x
    est = (2 * tm * tk * 2            # A tiles (bf16)
           + ek_bytes                 # E reduction operand (bf16)
           + 2 * tm * Dinp * 2        # E ego tiles (bf16)
           + 2 * 2 * Dinp * Doutp * 2 # W1, W2 (bf16, resident)
           + 2 * 2 * Doutp * 4        # b1, b2 (f32)
           + 2 * 2 * tm * Doutp * 2   # out, norm (bf16)
           + tm * Dinp * 4)           # accumulator scratch
    vmem_limit = min(48 * 1024 * 1024, max(32 * 1024 * 1024, int(est * 1.5)))

    # NOTE: deeper A buffering (pipeline_mode=pl.Buffered(3)) could hide the epilogue
    # bubble at row-tile boundaries; with tm up to 1024 the boundary count is small.
    out, norm = pl.pallas_call(
        functools.partial(_bi_interaction_kernel, resident_e=resident_e),
        out_shape=(jax.ShapeDtypeStruct((Np, Doutp), jnp.bfloat16),
                   jax.ShapeDtypeStruct((Np, Doutp), jnp.bfloat16)),
        grid_spec=pltpu.PrefetchScalarGridSpec(
            num_scalar_prefetch=0,
            grid=grid,
            in_specs=[
                pl.BlockSpec((tm, tk), lambda i, k: (i, k)),        # A[dst tile, src tile]
                ek_spec,                                            # E (reduction operand)
                pl.BlockSpec((tm, Dinp), lambda i, k: (i, 0)),      # E (ego rows)
                pl.BlockSpec((Dinp, Doutp), lambda i, k: (0, 0)),   # W1 (resident)
                pl.BlockSpec((1, Doutp), lambda i, k: (0, 0)),      # b1
                pl.BlockSpec((Dinp, Doutp), lambda i, k: (0, 0)),   # W2
                pl.BlockSpec((1, Doutp), lambda i, k: (0, 0)),      # b2
            ],
            out_specs=(pl.BlockSpec((tm, Doutp), lambda i, k: (i, 0)),
                       pl.BlockSpec((tm, Doutp), lambda i, k: (i, 0))),
            scratch_shapes=[pltpu.VMEM((tm, Dinp), jnp.float32)],
        ),
        compiler_params=pltpu.CompilerParams(
            dimension_semantics=("parallel", "arbitrary"),
            vmem_limit_bytes=vmem_limit),
    )(A_bf, E_bf, E_bf, W1p, b1p, W2p, b2p)
    return out, norm


def score_matmul(user_embed, item_embed):
    """cf_score = user_embed @ item_embed.T  (bf16 operands, K padded to 128, f32 acc)."""
    U, D = user_embed.shape
    I = item_embed.shape[0]
    Dp = _round_up(D, 128)                    # align the contraction dim for the MXU
    tu = min(512, _round_up(U, 8))
    ti = min(512, _round_up(I, 128))          # lane-dense output tiles
    Up = _round_up(U, tu)
    Ip = _round_up(I, ti)
    u_p = jnp.pad(user_embed.astype(jnp.bfloat16), ((0, Up - U), (0, Dp - D)))
    it_t = jnp.pad(item_embed.astype(jnp.bfloat16), ((0, Ip - I), (0, Dp - D))).T  # (Dp, Ip)
    out = pl.pallas_call(
        _score_kernel,
        out_shape=jax.ShapeDtypeStruct((Up, Ip), jnp.float32),
        grid_spec=pltpu.PrefetchScalarGridSpec(
            num_scalar_prefetch=0,
            grid=(Up // tu, Ip // ti),
            in_specs=[pl.BlockSpec((tu, Dp), lambda i, j: (i, 0)),
                      pl.BlockSpec((Dp, ti), lambda i, j: (0, j))],
            out_specs=pl.BlockSpec((tu, ti), lambda i, j: (i, j)),
        ),
        compiler_params=pltpu.CompilerParams(
            dimension_semantics=("parallel", "parallel")),
    )(u_p, it_t)
    return out[:U, :I]


def kg_loss_call(h_e, h_p, pt_e, pt_p, nt_e, nt_p, r_proj, r_e, lam):
    args = (h_e, h_p, pt_e, pt_p, nt_e, nt_p, r_proj, r_e)
    B = h_e.shape[0]
    tb = min(512, _round_up(B, 8))
    Bp = _round_up(B, tb)
    args = [jnp.pad(a.astype(jnp.float32), ((0, Bp - B), (0, 0))) for a in args]
    # TODO(synk): gathers E[h]/T[h] could be fused in-kernel via PrefetchScalarGridSpec
    # + pl.Element row-gather index_maps; they are done in the XLA wrapper here.
    loss = pl.pallas_call(
        functools.partial(_kg_loss_kernel, lam=float(lam), batch=B),
        out_shape=jax.ShapeDtypeStruct((1, 1), jnp.float32),
        grid_spec=pltpu.PrefetchScalarGridSpec(
            num_scalar_prefetch=0,
            grid=(Bp // tb,),
            in_specs=[pl.BlockSpec((tb, a.shape[1]), lambda b: (b, 0)) for a in args],
            out_specs=pl.BlockSpec((1, 1), lambda b: (0, 0)),
            scratch_shapes=[pltpu.SMEM((1,), jnp.float32)],
        ),
        compiler_params=pltpu.CompilerParams(dimension_semantics=("arbitrary",)),
    )(*args)
    return loss[0, 0]


def cf_loss_call(u, p, n, lam):
    args = (u, p, n)
    B, D = u.shape
    tb = min(512, _round_up(B, 8))
    Bp = _round_up(B, tb)
    args = [jnp.pad(a.astype(jnp.float32), ((0, Bp - B), (0, 0))) for a in args]
    loss = pl.pallas_call(
        functools.partial(_cf_loss_kernel, lam=float(lam), batch=B),
        out_shape=jax.ShapeDtypeStruct((1, 1), jnp.float32),
        grid_spec=pltpu.PrefetchScalarGridSpec(
            num_scalar_prefetch=0,
            grid=(Bp // tb,),
            in_specs=[pl.BlockSpec((tb, D), lambda b: (b, 0))] * 3,
            out_specs=pl.BlockSpec((1, 1), lambda b: (0, 0)),
            scratch_shapes=[pltpu.SMEM((1,), jnp.float32)],
        ),
        compiler_params=pltpu.CompilerParams(dimension_semantics=("arbitrary",)),
    )(*args)
    return loss[0, 0]


# ------------------------------- model (glue) ---------------------------------

def init_params(key, n_users, n_entities, n_relations,
                entity_dim, relation_dim, conv_dims):
    n_nodes = n_entities + n_users
    dims = [entity_dim] + list(conv_dims)
    ks = jax.random.split(key, 4 + 4 * len(conv_dims))
    params = {
        "relation_embed": jax.random.normal(ks[0], (n_relations, relation_dim),
                                            jnp.float32) * 0.1,
        "entity_user_embed": jax.random.normal(ks[1], (n_nodes, entity_dim),
                                               jnp.float32) * 0.1,
        "ent_user_transfer": jax.random.normal(ks[2], (n_nodes, entity_dim),
                                               jnp.float32) * 0.1,
        "rel_transfer": jax.random.normal(ks[3], (n_relations, relation_dim),
                                          jnp.float32) * 0.1,
        "agg_layers": [],
    }
    for k in range(len(conv_dims)):
        din, dout = dims[k], dims[k + 1]
        kk = ks[4 + 4 * k:8 + 4 * k]
        # nn.Linear weights stored transposed: (in, out)
        W1 = jax.random.normal(kk[0], (din, dout), jnp.float32) * 0.1
        b1 = jax.random.normal(kk[1], (dout,), jnp.float32) * 0.01
        W2 = jax.random.normal(kk[2], (din, dout), jnp.float32) * 0.1
        b2 = jax.random.normal(kk[3], (dout,), jnp.float32) * 0.01
        params["agg_layers"].append((W1, b1, W2, b2))
    return params


def prepare_graph(A):
    """Cast+pad the dense attention adjacency A[dst, src] to bf16 ONCE and reuse it
    across layers and across predict / calc_cf_loss calls (avoids an Np^2 HBM copy
    per forward).  Padded src columns are exactly zero, which the aggregator relies
    on to keep padded rows from contaminating valid rows."""
    if isinstance(A, dict):
        return A
    N = A.shape[0]
    Np, tm, tk = _agg_tiles(N)
    A_bf = jnp.pad(A.astype(jnp.bfloat16), ((0, Np - N), (0, Np - N)))
    return {"A_bf": A_bf, "N": N, "Np": Np, "tm": tm, "tk": tk}


def cf_embedding(params, graph, node_ids):
    graph = prepare_graph(graph)
    A_bf, Np, tm, tk = graph["A_bf"], graph["Np"], graph["tm"], graph["tk"]

    ego = params["entity_user_embed"][node_ids].astype(jnp.float32)   # (N, D0)
    N, D0 = ego.shape
    assert N == graph["N"], "node_ids must cover exactly the graph's nodes"

    Dp0 = _round_up(D0, 128)
    # single bf16 copy of E; it is passed twice (reduction + ego rows) to the kernel
    ego_bf = jnp.pad(ego, ((0, Np - N), (0, Dp0 - D0))).astype(jnp.bfloat16)

    all_embed = [ego]
    for (W1, b1, W2, b2) in params["agg_layers"]:
        Din, Dout = W1.shape
        Dinp = _round_up(Din, 128)
        Doutp = _round_up(Dout, 128)
        W1p = jnp.pad(W1.astype(jnp.bfloat16), ((0, Dinp - Din), (0, Doutp - Dout)))
        W2p = jnp.pad(W2.astype(jnp.bfloat16), ((0, Dinp - Din), (0, Doutp - Dout)))
        b1p = jnp.pad(b1.reshape(1, -1).astype(jnp.float32), ((0, 0), (0, Doutp - Dout)))
        b2p = jnp.pad(b2.reshape(1, -1).astype(jnp.float32), ((0, 0), (0, Doutp - Dout)))
        out_p, norm_p = bi_interaction_layer(A_bf, ego_bf, W1p, b1p, W2p, b2p, tm, tk)
        all_embed.append(norm_p[:N, :Dout].astype(jnp.float32))
        # NOTE: padded ROWS of out_p are nonzero (leaky_relu of the biases), but they can
        # never reach a valid row because A's padded columns are exactly zero; padded
        # feature COLUMNS are zero (zero-padded W/b), so the next layer's padded Din is safe.
        ego_bf = out_p            # bf16, already (Np, next-layer Dinp); no re-cast needed
    return jnp.concatenate(all_embed, axis=1)              # (N, sum(dims)) f32


def kgat_forward(params, hparams, mode, *inputs):
    if mode == "predict":
        g, node_ids, user_ids, item_ids = inputs
        all_embed = cf_embedding(params, g, node_ids)
        return score_matmul(all_embed[user_ids], all_embed[item_ids])
    if mode == "calc_kg_loss":
        h, r, pos_t, neg_t = inputs
        E, T = params["entity_user_embed"], params["ent_user_transfer"]
        return kg_loss_call(
            E[h], T[h], E[pos_t], T[pos_t], E[neg_t], T[neg_t],
            params["rel_transfer"][r], params["relation_embed"][r],
            hparams["kg_l2loss_lambda"])
    if mode == "calc_cf_loss":
        g, node_ids, user_ids, item_pos_ids, item_neg_ids = inputs
        all_embed = cf_embedding(params, g, node_ids)
        return cf_loss_call(all_embed[user_ids], all_embed[item_pos_ids],
                            all_embed[item_neg_ids], hparams["cf_l2loss_lambda"])
    if mode == "calc_att":
        # TODO(synk): DGL per-relation edge filtering + edge_softmax_fix has no clean
        # Pallas equivalent here; the attention matrix A is supplied densely instead.
        raise NotImplementedError
    raise ValueError(mode)


# ----------------------------------- main --------------------------------------

if __name__ == "__main__":
    key = jax.random.PRNGKey(0)
    n_users, n_entities, n_relations = 3, 5, 2
    entity_dim = relation_dim = 32
    conv_dims = [16, 8]                      # args.conv_dim_list = '[16, 8]'
    hparams = {"kg_l2loss_lambda": 1e-5, "cf_l2loss_lambda": 1e-5, "margin": 1.0}

    n_nodes = n_entities + n_users           # 8 graph nodes (entities + users)
    kp, ka1, ka2 = jax.random.split(key, 3)
    params = init_params(kp, n_users, n_entities, n_relations,
                         entity_dim, relation_dim, conv_dims)

    # dense attention adjacency A[dst, src]: random sparsity pattern, then
    # normalized over incoming edges (mimics edge_softmax over in-edges)
    mask = (jax.random.uniform(ka1, (n_nodes, n_nodes)) < 0.6).astype(jnp.float32)
    raw = jax.random.uniform(ka2, (n_nodes, n_nodes)) * mask
    A = raw / jnp.maximum(raw.sum(axis=1, keepdims=True), 1e-12)

    graph = prepare_graph(A)                 # bf16 cast + pad done once, reused below

    node_ids = jnp.arange(n_nodes)
    user_ids = jnp.array([n_entities, n_entities + 1])     # users live after entities
    item_ids = jnp.array([0, 1, 2, 3])

    # mode 'predict'
    scores = kgat_forward(params, hparams, "predict", graph, node_ids,
                          user_ids, item_ids)

    # mode 'calc_kg_loss'
    h = jnp.array([0, 1, 2, 3])
    r = jnp.array([0, 1, 0, 1])
    pos_t = jnp.array([4, 3, 2, 1])
    neg_t = jnp.array([1, 2, 3, 4])
    kg_loss = kgat_forward(params, hparams, "calc_kg_loss", h, r, pos_t, neg_t)

    # mode 'calc_cf_loss'
    cf_loss = kgat_forward(params, hparams, "calc_cf_loss", graph, node_ids,
                           user_ids, jnp.array([0, 1]), jnp.array([2, 3]))

    jax.block_until_ready((scores, kg_loss, cf_loss))
    assert scores.shape == (user_ids.shape[0], item_ids.shape[0])
    assert kg_loss.shape == () and cf_loss.shape == ()
    assert bool(jnp.isfinite(scores).all())
    assert bool(jnp.isfinite(kg_loss)) and bool(jnp.isfinite(cf_loss))
    print("KERNEL_OK")
</pallas_src>

<mosaic_0001>
module attributes {stable_mosaic.version = 11 : i64} {
  func.func @_bi_interaction_kernel(%arg0: i32, %arg1: i32, %arg2: memref<128x128xbf16, #tpu.memory_space<vmem>>, %arg3: memref<128x128xbf16, #tpu.memory_space<vmem>>, %arg4: memref<128x128xbf16, #tpu.memory_space<vmem>>, %arg5: memref<128x128xbf16, #tpu.memory_space<vmem>>, %arg6: memref<1x128xf32, #tpu.memory_space<vmem>>, %arg7: memref<128x128xbf16, #tpu.memory_space<vmem>>, %arg8: memref<1x128xf32, #tpu.memory_space<vmem>>, %arg9: memref<128x128xbf16, #tpu.memory_space<vmem>>, %arg10: memref<128x128xbf16, #tpu.memory_space<vmem>>, %arg11: memref<128x128xf32, #tpu.memory_space<vmem>>) attributes {dimension_semantics = [#tpu.dimension_semantics<parallel>, #tpu.dimension_semantics<arbitrary>], iteration_bounds = array<i64: 1, 1>, scalar_prefetch = 0 : i64, scratch_operands = 1 : i64, tpu.core_type = #tpu.core_type<tc>, window_params = [{transform_indices = @transform_0, window_bounds = array<i64: 128, 128>}, {pipeline_mode = #tpu.pipeline_mode<synchronous>, transform_indices = @transform_1, window_bounds = array<i64: 128, 128>}, {transform_indices = @transform_2, window_bounds = array<i64: 128, 128>}, {pipeline_mode = #tpu.pipeline_mode<synchronous>, transform_indices = @transform_3, window_bounds = array<i64: 128, 128>}, {pipeline_mode = #tpu.pipeline_mode<synchronous>, transform_indices = @transform_4, window_bounds = array<i64: 1, 128>}, {pipeline_mode = #tpu.pipeline_mode<synchronous>, transform_indices = @transform_5, window_bounds = array<i64: 128, 128>}, {pipeline_mode = #tpu.pipeline_mode<synchronous>, transform_indices = @transform_6, window_bounds = array<i64: 1, 128>}, {transform_indices = @transform_7, window_bounds = array<i64: 128, 128>}, {transform_indices = @transform_8, window_bounds = array<i64: 128, 128>}]} {
    %c0_i32 = arith.constant 0 : i32
    %0 = arith.cmpi eq, %arg1, %c0_i32 : i32
    %1 = arith.extui %0 : i1 to i32
    %c0_i32_0 = arith.constant 0 : i32
    %2 = arith.cmpi ne, %1, %c0_i32_0 : i32
    scf.if %2 {
      %cst_9 = arith.constant 0.000000e+00 : f32
      %15 = vector.broadcast %cst_9 : f32 to vector<128x128xf32>
      %c0_10 = arith.constant 0 : index
      %c0_11 = arith.constant 0 : index
      %16 = vector.load %arg11[%c0_10, %c0_11] : memref<128x128xf32, #tpu.memory_space<vmem>>, vector<128x128xf32>
      tpu.vector_store %arg11[%c0_10, %c0_11], %15 {strides = array<i32>} : memref<128x128xf32, #tpu.memory_space<vmem>>, vector<128x128xf32>,
    } else {
    }
    %c128_i32 = arith.constant 128 : i32
    %3 = arith.muli %arg1, %c128_i32 : i32
    %4 = tpu.assume_multiple %3, 128 : i32
    %5 = arith.index_cast %4 : i32 to index
    %c0 = arith.constant 0 : index
    %6 = vector.load %arg3[%5, %c0] : memref<128x128xbf16, #tpu.memory_space<vmem>>, vector<128x128xbf16>
    %c0_1 = arith.constant 0 : index
    %c0_2 = arith.constant 0 : index
    %7 = vector.load %arg11[%c0_1, %c0_2] : memref<128x128xf32, #tpu.memory_space<vmem>>, vector<128x128xf32>
    %c0_3 = arith.constant 0 : index
    %c0_4 = arith.constant 0 : index
    %8 = vector.load %arg2[%c0_3, %c0_4] : memref<128x128xbf16, #tpu.memory_space<vmem>>, vector<128x128xbf16>
    %cst = arith.constant dense<0.000000e+00> : vector<128x128xf32>
    %9 = tpu.matmul %8, %6, %cst {dimension_numbers = #tpu.dot_dimension_numbers<[1], [0], [0], [1], [0, 0, 1, 1], [], []>} : vector<128x128xbf16>, vector<128x128xbf16>, vector<128x128xf32> -> vector<128x128xf32>
    %10 = arith.addf %7, %9 : vector<128x128xf32>
    %c0_5 = arith.constant 0 : index
    %c0_6 = arith.constant 0 : index
    %11 = vector.load %arg11[%c0_5, %c0_6] : memref<128x128xf32, #tpu.memory_space<vmem>>, vector<128x128xf32>
    tpu.vector_store %arg11[%c0_5, %c0_6], %10 {strides = array<i32>} : memref<128x128xf32, #tpu.memory_space<vmem>>, vector<128x128xf32>,
    %c0_i32_7 = arith.constant 0 : i32
    %12 = arith.cmpi eq, %arg1, %c0_i32_7 : i32
    %13 = arith.extui %12 : i1 to i32
    %c0_i32_8 = arith.constant 0 : i32
    %14 = arith.cmpi ne, %13, %c0_i32_8 : i32
    scf.if %14 {
      %c0_9 = arith.constant 0 : index
      %c0_10 = arith.constant 0 : index
      %15 = vector.load %arg4[%c0_9, %c0_10] : memref<128x128xbf16, #tpu.memory_space<vmem>>, vector<128x128xbf16>
      %16 = arith.extf %15 : vector<128x128xbf16> to vector<128x128xf32>
      %c0_11 = arith.constant 0 : index
      %c0_12 = arith.constant 0 : index
      %17 = vector.load %arg11[%c0_11, %c0_12] : memref<128x128xf32, #tpu.memory_space<vmem>>, vector<128x128xf32>
      %18 = arith.addf %16, %17 : vector<128x128xf32>
      %19 = arith.truncf %18 : vector<128x128xf32> to vector<128x128xbf16>
      %20 = arith.mulf %16, %17 : vector<128x128xf32>
      %21 = arith.truncf %20 : vector<128x128xf32> to vector<128x128xbf16>
      %c0_13 = arith.constant 0 : index
      %c0_14 = arith.constant 0 : index
      %22 = vector.load %arg5[%c0_13, %c0_14] : memref<128x128xbf16, #tpu.memory_space<vmem>>, vector<128x128xbf16>
      %cst_15 = arith.constant dense<0.000000e+00> : vector<128x128xf32>
      %23 = tpu.matmul %19, %22, %cst_15 {dimension_numbers = #tpu.dot_dimension_numbers<[1], [0], [0], [1], [0, 0, 1, 1], [], []>} : vector<128x128xbf16>, vector<128x128xbf16>, vector<128x128xf32> -> vector<128x128xf32>
      %c0_16 = arith.constant 0 : index
      %c0_17 = arith.constant 0 : index
      %24 = vector.load %arg6[%c0_16, %c0_17] : memref<1x128xf32, #tpu.memory_space<vmem>>, vector<1x128xf32>
      %25 = vector.broadcast %24 : vector<1x128xf32> to vector<128x128xf32>
      %26 = arith.addf %23, %25 : vector<128x128xf32>
      %cst_18 = arith.constant 0.000000e+00 : f32
      %27 = vector.broadcast %cst_18 : f32 to vector<128x128xf32>
      %28 = arith.cmpf oge, %26, %27 : vector<128x128xf32>
      %cst_19 = arith.constant 0.00999999977 : f32
      %29 = vector.broadcast %cst_19 : f32 to vector<128x128xf32>
      %30 = arith.mulf %29, %26 : vector<128x128xf32>
      %31 = arith.select %28, %26, %30 : vector<128x128xi1>, vector<128x128xf32>
      %c0_20 = arith.constant 0 : index
      %c0_21 = arith.constant 0 : index
      %32 = vector.load %arg7[%c0_20, %c0_21] : memref<128x128xbf16, #tpu.memory_space<vmem>>, vector<128x128xbf16>
      %cst_22 = arith.constant dense<0.000000e+00> : vector<128x128xf32>
      %33 = tpu.matmul %21, %32, %cst_22 {dimension_numbers = #tpu.dot_dimension_numbers<[1], [0], [0], [1], [0, 0, 1, 1], [], []>} : vector<128x128xbf16>, vector<128x128xbf16>, vector<128x128xf32> -> vector<128x128xf32>
      %c0_23 = arith.constant 0 : index
      %c0_24 = arith.constant 0 : index
      %34 = vector.load %arg8[%c0_23, %c0_24] : memref<1x128xf32, #tpu.memory_space<vmem>>, vector<1x128xf32>
      %35 = vector.broadcast %34 : vector<1x128xf32> to vector<128x128xf32>
      %36 = arith.addf %33, %35 : vector<128x128xf32>
      %cst_25 = arith.constant 0.000000e+00 : f32
      %37 = vector.broadcast %cst_25 : f32 to vector<128x128xf32>
      %38 = arith.cmpf oge, %36, %37 : vector<128x128xf32>
      %cst_26 = arith.constant 0.00999999977 : f32
      %39 = vector.broadcast %cst_26 : f32 to vector<128x128xf32>
      %40 = arith.mulf %39, %36 : vector<128x128xf32>
      %41 = arith.select %38, %36, %40 : vector<128x128xi1>, vector<128x128xf32>
      %42 = arith.addf %31, %41 : vector<128x128xf32>
      %43 = arith.truncf %42 : vector<128x128xf32> to vector<128x128xbf16>
      %c0_27 = arith.constant 0 : index
      %c0_28 = arith.constant 0 : index
      %44 = vector.load %arg9[%c0_27, %c0_28] : memref<128x128xbf16, #tpu.memory_space<vmem>>, vector<128x128xbf16>
      tpu.vector_store %arg9[%c0_27, %c0_28], %43 {strides = array<i32>} : memref<128x128xbf16, #tpu.memory_space<vmem>>, vector<128x128xbf16>,
      %45 = arith.mulf %42, %42 : vector<128x128xf32>
      %cst_29 = arith.constant dense<0.000000e+00> : vector<128xf32>
      %46 = vector.multi_reduction <add>, %45, %cst_29 [1] : vector<128x128xf32> to vector<128xf32>
      %47 = vector.shape_cast %46 : vector<128xf32> to vector<128x1xf32>
      %cst_30 = arith.constant 1.000000e-24 : f32
      %48 = vector.broadcast %cst_30 : f32 to vector<128x1xf32>
      %49 = arith.maximumf %47, %48 : vector<128x1xf32>
      %50 = math.rsqrt %49 : vector<128x1xf32>
      %51 = vector.broadcast %50 : vector<128x1xf32> to vector<128x128xf32>
      %52 = arith.mulf %42, %51 : vector<128x128xf32>
      %53 = arith.truncf %52 : vector<128x128xf32> to vector<128x128xbf16>
      %c0_31 = arith.constant 0 : index
      %c0_32 = arith.constant 0 : index
      %54 = vector.load %arg10[%c0_31, %c0_32] : memref<128x128xbf16, #tpu.memory_space<vmem>>, vector<128x128xbf16>
      tpu.vector_store %arg10[%c0_31, %c0_32], %53 {strides = array<i32>} : memref<128x128xbf16, #tpu.memory_space<vmem>>, vector<128x128xbf16>,
    } else {
    }
    return
  }
  func.func @transform_0(%arg0: i32, %arg1: i32) -> (i32, i32) {
    %c0_i32 = arith.constant 0 : i32
    return %arg0, %arg1 : i32, i32
  }
  func.func @transform_1(%arg0: i32, %arg1: i32) -> (i32, i32) {
    %c0_i32 = arith.constant 0 : i32
    %c0_i32_0 = arith.constant 0 : i32
    %c0_i32_1 = arith.constant 0 : i32
    return %c0_i32, %c0_i32_0 : i32, i32
  }
  func.func @transform_2(%arg0: i32, %arg1: i32) -> (i32, i32) {
    %c0_i32 = arith.constant 0 : i32
    %c0_i32_0 = arith.constant 0 : i32
    return %arg0, %c0_i32 : i32, i32
  }
  func.func @transform_3(%arg0: i32, %arg1: i32) -> (i32, i32) {
    %c0_i32 = arith.constant 0 : i32
    %c0_i32_0 = arith.constant 0 : i32
    %c0_i32_1 = arith.constant 0 : i32
    return %c0_i32, %c0_i32_0 : i32, i32
  }
  func.func @transform_4(%arg0: i32, %arg1: i32) -> (i32, i32) {
    %c0_i32 = arith.constant 0 : i32
    %c0_i32_0 = arith.constant 0 : i32
    %c0_i32_1 = arith.constant 0 : i32
    return %c0_i32, %c0_i32_0 : i32, i32
  }
  func.func @transform_5(%arg0: i32, %arg1: i32) -> (i32, i32) {
    %c0_i32 = arith.constant 0 : i32
    %c0_i32_0 = arith.constant 0 : i32
    %c0_i32_1 = arith.constant 0 : i32
    return %c0_i32, %c0_i32_0 : i32, i32
  }
  func.func @transform_6(%arg0: i32, %arg1: i32) -> (i32, i32) {
    %c0_i32 = arith.constant 0 : i32
    %c0_i32_0 = arith.constant 0 : i32
    %c0_i32_1 = arith.constant 0 : i32
    return %c0_i32, %c0_i32_0 : i32, i32
  }
  func.func @transform_7(%arg0: i32, %arg1: i32) -> (i32, i32) {
    %c0_i32 = arith.constant 0 : i32
    %c0_i32_0 = arith.constant 0 : i32
    return %arg0, %c0_i32 : i32, i32
  }
  func.func @transform_8(%arg0: i32, %arg1: i32) -> (i32, i32) {
    %c0_i32 = arith.constant 0 : i32
    %c0_i32_0 = arith.constant 0 : i32
    return %arg0, %c0_i32 : i32, i32
  }
}

</mosaic_0001>

<bundles_post_ra>
// kernel: tpu_custom_call.1
= control target key start
LH: loop header
LB: loop body
LE: loop exit
PB: predicated region body
PF: predicated region fallthrough
CT: control target
= control target key end

     0   :  { %14 = vsyncpa [#allocation4], 0  ;;  %s1961_s0 = inlined_call_operand.hbm [shape: bf16[128,128], index: 0, kind: input, shape index: {}]   ;;  %s1962_s1 = inlined_call_operand.hbm [shape: bf16[128,128], index: 1, kind: input, shape index: {}]   ;;  %s1963_s2 = inlined_call_operand.hbm [shape: bf16[128,128], index: 2, kind: input, shape index: {}]   ;;  %s1964_s3 = inlined_call_operand.hbm [shape: bf16[128,128], index: 3, kind: input, shape index: {}]   ;;  %s1965_s4 = inlined_call_operand.vmem [shape: f32[1,128], index: 4, kind: input, shape index: {}]   ;;  %s1966_s5 = inlined_call_operand.hbm [shape: bf16[128,128], index: 5, kind: input, shape index: {}]   ;;  %s1967_s6 = inlined_call_operand.vmem [shape: f32[1,128], index: 6, kind: input, shape index: {}]   ;;  %s1968_s7 = inlined_call_operand.hbm [shape: bf16[128,128], index: 7, kind: output, shape index: {0}]   ;;  %s1969_s8 = inlined_call_operand.hbm [shape: bf16[128,128], index: 8, kind: output, shape index: {1}]  }
   0x1   :  { %15 = vsyncpa [#allocation7], 0 }
   0x2   :  { %16 = vsyncpa [#allocation10], 0 }
   0x3   :  { %17 = vsyncpa [#allocation5], 0 }
   0x4   :  { %18 = vsyncpa [#allocation14], 0  ;;  %s36_s29 = sshll.u32 %s1962_s1, 4  ;;  %s1686_s30 = smov [#allocation6]   ;;  %s37_s29 = int_to_ptr.hbm [resolvable:$true] %s36_s29 }
   0x5   :  { %s38_s9 = sshll.u32 %s1686_s30, 4  ;;  %s62_s12 = sshll.u32 %s1964_s3, 4  ;;  %s39_s9 = int_to_ptr.vmem [resolvable:$true] %s38_s9  ;;  %s63_s12 = int_to_ptr.hbm [resolvable:$true] %s62_s12 }
   0x6   :  { %s1687_s13 = smov 64   ;;  %s1688_s14 = smov 4  }
   0x7   :  { %44 = dma.hbm_to_vmem [thread:$0]  %s37_s29, 1024, %s39_s9, [#allocation7], %s1687_s13, %s1687_s13, %s1688_s14  }
   0x8   :  { %s1689_s15 = smov [#allocation9]   ;;  %s23_s1 = sshll.u32 %s1961_s0, 4  ;;  %s24_s1 = int_to_ptr.hbm [resolvable:$true] %s23_s1 }
   0x9   :  { %s64_s16 = sshll.u32 %s1689_s15, 4  ;;  %s49_s20 = sshll.u32 %s1963_s2, 4  ;;  %s65_s16 = int_to_ptr.vmem [resolvable:$true] %s64_s16  ;;  %s50_s20 = int_to_ptr.hbm [resolvable:$true] %s49_s20 }
   0xa   :  { %70 = dma.hbm_to_vmem [thread:$0]  %s63_s12, 1024, %s65_s16, [#allocation10], %s1687_s13, %s1687_s13, %s1688_s14  }
   0xb   :  { %s1690_s21 = smov [#allocation3]   ;;  %s1691_s23 = smov [#allocation8]  }
   0xc   :  { %s25_s22 = sshll.u32 %s1690_s21, 4  ;;  %s51_s0 = sshll.u32 %s1691_s23, 4  ;;  %s26_s22 = int_to_ptr.vmem [resolvable:$true] %s25_s22  ;;  %s52_s0 = int_to_ptr.vmem [resolvable:$true] %s51_s0 }
   0xd   :  { %31 = dma.hbm_to_vmem [thread:$0]  %s24_s1, 1024, %s26_s22, [#allocation4], %s1687_s13, %s1687_s13, %s1688_s14  }
   0xe   :  { %s77_s26 = sshll.u32 %s1966_s5, 4  ;;  %s1692_s2 = smov [#allocation11]   ;;  %s78_s26 = int_to_ptr.hbm [resolvable:$true] %s77_s26 }
   0xf   :  { %57 = dma.hbm_to_vmem [thread:$0]  %s50_s20, 1024, %s52_s0, [#allocation7], %s1687_s13, %s1687_s13, %s1688_s14  }
  0x10   :  { %s79_s27 = sshll.u32 %s1692_s2, 4  ;;  %s80_s27 = int_to_ptr.vmem [resolvable:$true] %s79_s27 }
  0x11   :  { %85 = dma.hbm_to_vmem [thread:$0]  %s78_s26, 1024, %s80_s27, [#allocation10], %s1687_s13, %s1687_s13, %s1688_s14  }
  0x12   :  { %1676 = dma.done.wait [#allocation4], 1024  }
  0x13   :  { %1677 = vsyncadd [#allocation4], 4294966272 }
  0x14   :  { %1678 = dma.done.wait [#allocation7], 2048  }
  0x15   :  { %1679 = vsyncadd [#allocation7], 4294965248 }
  0x16   :  { %1680 = dma.done.wait [#allocation10], 2048  }
  0x17   :  { %1681 = vsyncadd [#allocation10], 4294965248  ;;  %v1283_v0 = vld [vmem:[#allocation6 + $0x38] sm:$0xff]  ;;  %v1282_v1 = vld [vmem:[#allocation6 + $0x30] sm:$0xff]  ;;  %s1113_s11 = sshll.u32 %s1968_s7, 4  ;;  %s1694_s7 = smov [#allocation13]   ;;  %s1114_s11 = int_to_ptr.hbm [resolvable:$true] %s1113_s11 }
  0x18   :  { %277 = vmatpush.bf16.msra.mxu0 %v1283_v0  ;;  %1441 = vmatpush.bf16.msra.mxu3 %v1283_v0  ;;  %v1281_v2 = vld [vmem:[#allocation6 + $0x28] sm:$0xff]  ;;  %v1280_v3 = vld [vmem:[#allocation6 + $0x20] sm:$0xff]  ;;  %v1279_v4 = vld [vmem:[#allocation6 + $0x18] sm:$0xff]  ;;  %s1124_s12 = sshll.u32 %s1694_s7, 4  ;;  %s1126_s17 = sshll.u32 %s1969_s8, 4  ;;  %s1125_s12 = int_to_ptr.vmem [resolvable:$true] %s1124_s12  ;;  %s1127_s17 = int_to_ptr.hbm [resolvable:$true] %s1126_s17 }
  0x19   :  { %v1278_v5 = vld [vmem:[#allocation6 + $0x10] sm:$0xff]  ;;  %v1277_v6 = vld [vmem:[#allocation6 + $0x8] sm:$0xff]  ;;  %v1276_v7 = vld [vmem:[#allocation6] sm:$0xff] }
  0x1a   :  { %v1284_v8 = vld [vmem:[#allocation3] sm:$0xff]  ;;  %v1290_v9 = vld [vmem:[#allocation3 + $0x30] sm:$0xff]  ;;  %v1285_v10 = vld [vmem:[#allocation3 + $0x8] sm:$0xff] }
  0x1b   :  { %v1291_v11 = vld [vmem:[#allocation3 + $0x38] sm:$0xff]  ;;  %v1286_v12 = vld [vmem:[#allocation3 + $0x10] sm:$0xff]  ;;  %v1297_v18 = vld [vmem:[#allocation9 + $0x28] sm:$0xff] }
  0x1c   :  { %278 = vmatpush.bf16.msra.mxu0 %v1282_v1  ;;  %1442 = vmatpush.bf16.msra.mxu3 %v1282_v1  ;;  %v1287_v13 = vld [vmem:[#allocation3 + $0x18] sm:$0xff]  ;;  %v1298_v16 = vld [vmem:[#allocation9 + $0x30] sm:$0xff]  ;;  %v1305_v19 = vld [vmem:[#allocation11 + $0x28] sm:$0xff] }
  0x1d   :  { %v1299_v14 = vld [vmem:[#allocation9 + $0x38] sm:$0xff]  ;;  %v1306_v17 = vld [vmem:[#allocation11 + $0x30] sm:$0xff]  ;;  %v1296_v20 = vld [vmem:[#allocation9 + $0x20] sm:$0xff] }
  0x1e   :  { %v1307_v15 = vld [vmem:[#allocation11 + $0x38] sm:$0xff]  ;;  %525 = vmatpush.bf16.msra.mxu1 %v1299_v14  ;;  %v1304_v21 = vld [vmem:[#allocation11 + $0x20] sm:$0xff]  ;;  %v1289_v25 = vld [vmem:[#allocation3 + $0x28] sm:$0xff] }
  0x1f   :  { %690 = vmatpush.bf16.msra.mxu2 %v1307_v15  ;;  %v1288_v22 = vld [vmem:[#allocation3 + $0x20] sm:$0xff]  ;;  %v1295_v23 = vld [vmem:[#allocation9 + $0x18] sm:$0xff]  ;;  %v1294_v26 = vld [vmem:[#allocation9 + $0x10] sm:$0xff] }
  0x20   :  { %279 = vmatpush.bf16.msra.mxu0 %v1281_v2  ;;  %1443 = vmatpush.bf16.msra.mxu3 %v1281_v2  ;;  %v1303_v24 = vld [vmem:[#allocation11 + $0x18] sm:$0xff]  ;;  %v1302_v27 = vld [vmem:[#allocation11 + $0x10] sm:$0xff]  ;;  %v1293_v28 = vld [vmem:[#allocation9 + $0x8] sm:$0xff] }
  0x21   :  { %v1301_v29 = vld [vmem:[#allocation11 + $0x8] sm:$0xff]  ;;  %v1292_v30 = vld [vmem:[#allocation9] sm:$0xff]  ;;  %v1425_v35 = vld [vmem:[#allocation8 + $0x30] sm:$0xff]  }
  0x22   :  { %526 = vmatpush.bf16.msra.mxu1 %v1298_v16  ;;  %v1300_v31 = vld [vmem:[#allocation11] sm:$0xff]  ;;  %v1334_v38 = vunpack.c.l.bf16 %v1425_v35  ;;  %v1335_v46 = vunpack.c.h.bf16 %v1425_v35  ;;  %v1420_v52 = vld [vmem:[#allocation8 + $0x8] sm:$0xff]   ;;  %v1426_v54 = vld [vmem:[#allocation8 + $0x38] sm:$0xff]  }
  0x23   :  { %691 = vmatpush.bf16.msra.mxu2 %v1306_v17  ;;  %v1309_v33 = vld [vmem:[#allocation8] sm:$0xff]   ;;  %v1314_v53 = vunpack.c.l.bf16 %v1420_v52  ;;  %v1315_v55 = vunpack.c.h.bf16 %v1420_v52  ;;  %v1338_v57 = vunpack.c.l.bf16 %v1426_v54  ;;  %v1339_v1 = vunpack.c.h.bf16 %v1426_v54 }
  0x24   :  { %280 = vmatpush.bf16.msra.mxu0 %v1280_v3  ;;  %1444 = vmatpush.bf16.msra.mxu3 %v1280_v3  ;;  %v1310_v34 = vunpack.c.l.bf16 %v1309_v33  ;;  %v1311_v36 = vunpack.c.h.bf16 %v1309_v33  ;;  %v1423_v35 = vld [vmem:[#allocation8 + $0x20] sm:$0xff]  }
  0x26   :  { %527 = vmatpush.bf16.msra.mxu1 %v1297_v18 }
  0x27   :  { %692 = vmatpush.bf16.msra.mxu2 %v1305_v19 }
  0x28   :  { %281 = vmatpush.bf16.msra.mxu0 %v1279_v4  ;;  %1445 = vmatpush.bf16.msra.mxu3 %v1279_v4 }
  0x2a   :  { %528 = vmatpush.bf16.msra.mxu1 %v1296_v20 }
  0x2b   :  { %693 = vmatpush.bf16.msra.mxu2 %v1304_v21 }
  0x2c   :  { %282 = vmatpush.bf16.msra.mxu0 %v1278_v5  ;;  %1446 = vmatpush.bf16.msra.mxu3 %v1278_v5 }
  0x2e   :  { %529 = vmatpush.bf16.msra.mxu1 %v1295_v23 }
  0x2f   :  { %694 = vmatpush.bf16.msra.mxu2 %v1303_v24 }
  0x30   :  { %283 = vmatpush.bf16.msra.mxu0 %v1277_v6  ;;  %1447 = vmatpush.bf16.msra.mxu3 %v1277_v6 }
  0x32   :  { %530 = vmatpush.bf16.msra.mxu1 %v1294_v26 }
  0x33   :  { %695 = vmatpush.bf16.msra.mxu2 %v1302_v27 }
  0x34   :  { %284 = vmatpush.bf16.msra.mxu0 %v1276_v7  ;;  %1448 = vmatpush.bf16.msra.mxu3 %v1276_v7  ;;  %v1421_v7 = vld [vmem:[#allocation8 + $0x10] sm:$0xff]  }
  0x36   :  { %531 = vmatpush.bf16.msra.mxu1 %v1293_v28 }
  0x37   :  { %285 = vmatmul.bf16.vlgmr.msra.gmra.mxu0 %v1284_v8  ;;  %315 = vmatmul.bf16.vlgmr.msra.gmra.mxu3 %v1290_v9  ;;  %v1318_v8 = vunpack.c.l.bf16 %v1421_v7  ;;  %v1319_v9 = vunpack.c.h.bf16 %v1421_v7 }
  0x38   :  { %1449 = vmatpush.bf16.msrb.mxu3 %v1299_v14  ;;  %696 = vmatpush.bf16.msra.mxu2 %v1301_v29 }
  0x3a   :  { %532 = vmatpush.bf16.msra.mxu1 %v1292_v30 }
  0x3c   :  { %1450 = vmatpush.bf16.msrb.mxu3 %v1298_v16  ;;  %697 = vmatpush.bf16.msra.mxu2 %v1300_v31 }
  0x40   :  { %1451 = vmatpush.bf16.msrb.mxu3 %v1297_v18 }
  0x44   :  { %1452 = vmatpush.bf16.msrb.mxu3 %v1296_v20 }
  0x47   :  { %290 = vmatmul.bf16.gmra.mxu0 %v1285_v10  ;;  %320 = vmatmul.bf16.gmra.mxu3 %v1291_v11 }
  0x48   :  { %1453 = vmatpush.bf16.msrb.mxu3 %v1295_v23 }
  0x4c   :  { %1454 = vmatpush.bf16.msrb.mxu3 %v1294_v26 }
  0x50   :  { %1455 = vmatpush.bf16.msrb.mxu3 %v1293_v28 }
  0x54   :  { %1456 = vmatpush.bf16.msrb.mxu3 %v1292_v30 }
  0x57   :  { %295 = vmatmul.bf16.gmra.mxu0 %v1286_v12 }
  0x58   :  { %1457 = vmatpush.bf16.msra.mxu3 %v1307_v15 }
  0x5c   :  { %1458 = vmatpush.bf16.msra.mxu3 %v1306_v17 }
  0x60   :  { %1459 = vmatpush.bf16.msra.mxu3 %v1305_v19 }
  0x64   :  { %1460 = vmatpush.bf16.msra.mxu3 %v1304_v21  ;;  %v1422_v21 = vld [vmem:[#allocation8 + $0x18] sm:$0xff]  }
  0x65   :  { %v1323_v23 = vunpack.c.h.bf16 %v1422_v21 }
  0x67   :  { %300 = vmatmul.bf16.gmra.mxu0 %v1287_v13 }
  0x68   :  { %1461 = vmatpush.bf16.msra.mxu3 %v1303_v24 }
  0x6c   :  { %1462 = vmatpush.bf16.msra.mxu3 %v1302_v27 }
  0x70   :  { %1463 = vmatpush.bf16.msra.mxu3 %v1301_v29 }
  0x74   :  { %1464 = vmatpush.bf16.msra.mxu3 %v1300_v31 }
  0x77   :  { %305 = vmatmul.bf16.gmra.mxu0 %v1288_v22  ;;  %v1322_v22 = vunpack.c.l.bf16 %v1422_v21 }
  0x87   :  { %310 = vmatmul.bf16.gmra.mxu0 %v1289_v25 }
  0xb4   :  { %v286_v32 = vpop.f32.mrf.mxu0 }
  0xb5   :  { %v409_v40 = vadd.f32 %v1310_v34, %v286_v32  ;;  %v433_v41 = vmul.f32 %v1310_v34, %v286_v32 }
  0xba   :  { %v316_v37 = vpop.f32.mrf.mxu3 }
  0xbb   :  { %v421_v47 = vadd.f32 %v1334_v38, %v316_v37  ;;  %v445_v17 = vmul.f32 %v1334_v38, %v316_v37  ;;  %v1327_v37 = vunpack.c.h.bf16 %v1423_v35 }
  0xbc   :  { %v288_v39 = vpop.f32.mrf.mxu0 }
  0xbd   :  { %v410_v42 = vadd.f32 %v1311_v36, %v288_v39  ;;  %v434_v43 = vmul.f32 %v1311_v36, %v288_v39  ;;  %v1326_v36 = vunpack.c.l.bf16 %v1423_v35 }
  0xbf   :  { %v425_v44 = vpack.c.bf16 %v410_v42, %v409_v40  ;;  %v449_v45 = vpack.c.bf16 %v434_v43, %v433_v41 }
  0xc1   :  { %533 = vmatmul.bf16.vlgmr.msra.gmra.mxu1 %v425_v44  ;;  %698 = vmatmul.bf16.vlgmr.msra.gmra.mxu2 %v449_v45 }
  0xc2   :  { %v318_v48 = vpop.f32.mrf.mxu3 }
  0xc3   :  { %v422_v49 = vadd.f32 %v1335_v46, %v318_v48  ;;  %v446_v18 = vmul.f32 %v1335_v46, %v318_v48  ;;  %v1424_v46 = vld [vmem:[#allocation8 + $0x28] sm:$0xff]  }
  0xc4   :  { %v291_v50 = vpop.f32.mrf.mxu0  ;;  %v1331_v48 = vunpack.c.h.bf16 %v1424_v46 }
  0xc5   :  { %v431_v51 = vpack.c.bf16 %v422_v49, %v421_v47  ;;  %v411_v59 = vadd.f32 %v1314_v53, %v291_v50  ;;  %v435_v60 = vmul.f32 %v1314_v53, %v291_v50  ;;  %v455_v20 = vpack.c.bf16 %v446_v18, %v445_v17 }
  0xc6   :  { %v1330_v47 = vunpack.c.l.bf16 %v1424_v46 }
  0xc7   :  { %563 = vmatmul.bf16.vlgmr.msrb.gmra.mxu3 %v431_v51 }
  0xca   :  { %v321_v56 = vpop.f32.mrf.mxu3 }
  0xcb   :  { %v423_v2 = vadd.f32 %v1338_v57, %v321_v56  ;;  %v447_v31 = vmul.f32 %v1338_v57, %v321_v56  ;;  %v1773_v56 = vld [vmem:[%s1965_s4] ss:$0 sm:$0xff]  ;;  %s1693_s4 = smov [#allocation12]  }
  0xcc   :  { %v293_v58 = vpop.f32.mrf.mxu0 }
  0xcd   :  { %v412_v61 = vadd.f32 %v1315_v55, %v293_v58  ;;  %v436_v62 = vmul.f32 %v1315_v55, %v293_v58 }
  0xcf   :  { %v426_v63 = vpack.c.bf16 %v412_v61, %v411_v59  ;;  %v450_v0 = vpack.c.bf16 %v436_v62, %v435_v60  ;;  %v1779_v59 = vld [vmem:[%s1967_s6] ss:$0 sm:$0xff]  ;;  %s1111_s6 = sshll.u32 %s1693_s4, 4  ;;  %s1112_s6 = int_to_ptr.vmem [resolvable:$true] %s1111_s6 }
  0xd1   :  { %538 = vmatmul.bf16.gmra.mxu1 %v426_v63  ;;  %703 = vmatmul.bf16.gmra.mxu2 %v450_v0 }
  0xd2   :  { %v323_v3 = vpop.f32.mrf.mxu3 }
  0xd3   :  { %v424_v4 = vadd.f32 %v1339_v1, %v323_v3  ;;  %v448_v32 = vmul.f32 %v1339_v1, %v323_v3 }
  0xd4   :  { %v296_v5 = vpop.f32.mrf.mxu0 }
  0xd5   :  { %v432_v6 = vpack.c.bf16 %v424_v4, %v423_v2  ;;  %v413_v11 = vadd.f32 %v1318_v8, %v296_v5  ;;  %v437_v12 = vmul.f32 %v1318_v8, %v296_v5  ;;  %v456_v34 = vpack.c.bf16 %v448_v32, %v447_v31 }
  0xd7   :  { %568 = vmatmul.bf16.gmra.mxu3 %v432_v6 }
  0xdc   :  { %v298_v10 = vpop.f32.mrf.mxu0 }
  0xdd   :  { %v414_v13 = vadd.f32 %v1319_v9, %v298_v10  ;;  %v438_v14 = vmul.f32 %v1319_v9, %v298_v10 }
  0xdf   :  { %v427_v15 = vpack.c.bf16 %v414_v13, %v413_v11  ;;  %v451_v16 = vpack.c.bf16 %v438_v14, %v437_v12 }
  0xe1   :  { %543 = vmatmul.bf16.gmra.mxu1 %v427_v15  ;;  %708 = vmatmul.bf16.gmra.mxu2 %v451_v16 }
  0xe4   :  { %v301_v19 = vpop.f32.mrf.mxu0 }
  0xe5   :  { %v415_v25 = vadd.f32 %v1322_v22, %v301_v19  ;;  %v439_v26 = vmul.f32 %v1322_v22, %v301_v19 }
  0xe7   :  { %728 = vmatmul.bf16.vlgmr.msra.gmra.mxu3 %v455_v20 }
  0xec   :  { %v303_v24 = vpop.f32.mrf.mxu0 }
  0xed   :  { %v416_v27 = vadd.f32 %v1323_v23, %v303_v24  ;;  %v440_v28 = vmul.f32 %v1323_v23, %v303_v24 }
  0xef   :  { %v428_v29 = vpack.c.bf16 %v416_v27, %v415_v25  ;;  %v452_v30 = vpack.c.bf16 %v440_v28, %v439_v26 }
  0xf1   :  { %548 = vmatmul.bf16.gmra.mxu1 %v428_v29  ;;  %713 = vmatmul.bf16.gmra.mxu2 %v452_v30 }
  0xf4   :  { %v306_v33 = vpop.f32.mrf.mxu0 }
  0xf5   :  { %v417_v39 = vadd.f32 %v1326_v36, %v306_v33  ;;  %v441_v40 = vmul.f32 %v1326_v36, %v306_v33 }
  0xf7   :  { %733 = vmatmul.bf16.gmra.mxu3 %v456_v34 }
  0xfc   :  { %v308_v38 = vpop.f32.mrf.mxu0 }
  0xfd   :  { %v418_v41 = vadd.f32 %v1327_v37, %v308_v38  ;;  %v442_v42 = vmul.f32 %v1327_v37, %v308_v38 }
  0xff   :  { %v429_v43 = vpack.c.bf16 %v418_v41, %v417_v39  ;;  %v453_v44 = vpack.c.bf16 %v442_v42, %v441_v40 }
 0x101   :  { %553 = vmatmul.bf16.gmra.mxu1 %v429_v43  ;;  %718 = vmatmul.bf16.gmra.mxu2 %v453_v44 }
 0x104   :  { %v311_v45 = vpop.f32.mrf.mxu0 }
 0x105   :  { %v419_v50 = vadd.f32 %v1330_v47, %v311_v45  ;;  %v443_v51 = vmul.f32 %v1330_v47, %v311_v45 }
 0x10c   :  { %v313_v49 = vpop.f32.mrf.mxu0 }
 0x10d   :  { %v420_v52 = vadd.f32 %v1331_v48, %v313_v49  ;;  %v444_v53 = vmul.f32 %v1331_v48, %v313_v49 }
 0x10f   :  { %v430_v54 = vpack.c.bf16 %v420_v52, %v419_v50  ;;  %v454_v55 = vpack.c.bf16 %v444_v53, %v443_v51 }
 0x111   :  { %558 = vmatmul.bf16.gmra.mxu1 %v430_v54  ;;  %723 = vmatmul.bf16.gmra.mxu2 %v454_v55 }
 0x13e   :  { %v534_v57 = vpop.f32.mrf.mxu1 }
 0x13f   :  { %v535_v58 = vadd.f32 %v1773_v56, %v534_v57 }
 0x141   :  { %v590_v61 = vmul.f32 0.01, %v535_v58  ;;  %vm574_vm0 = vcmp.ge.f32.partialorder %v535_v58, 0.0 }
 0x143   :  { %v606_v1 = vsel %vm574_vm0, %v535_v58, %v590_v61 }
 0x144   :  { %v699_v60 = vpop.f32.mrf.mxu2 }
 0x145   :  { %v700_v62 = vadd.f32 %v1779_v59, %v699_v60 }
 0x146   :  { %v536_v63 = vpop.f32.mrf.mxu1 }
 0x147   :  { %vm739_vm1 = vcmp.ge.f32.partialorder %v700_v62, 0.0  ;;  %v755_v0 = vmul.f32 0.01, %v700_v62  ;;  %v537_v3 = vadd.f32 %v1773_v56, %v536_v63 }
 0x149   :  { %v771_v2 = vsel %vm739_vm1, %v700_v62, %v755_v0  ;;  %v591_v8 = vmul.f32 0.01, %v537_v3  ;;  %vm575_vm2 = vcmp.ge.f32.partialorder %v537_v3, 0.0 }
 0x14a   :  { %v564_v4 = vpop.f32.mrf.mxu3  ;;  %v1783_v5 = vadd.f32 %v771_v2, %v606_v1 }
 0x14b   :  { %v607_v12 = vsel %vm575_vm2, %v537_v3, %v591_v8  ;;  %v565_v45 = vadd.f32 %v1773_v56, %v564_v4 }
 0x14c   :  { %v701_v6 = vpop.f32.mrf.mxu2  ;;  %v835_v7 = vmul.f32 %v1783_v5, %v1783_v5 }
 0x14d   :  { %v702_v9 = vadd.f32 %v1779_v59, %v701_v6  ;;  %v602_v51 = vmul.f32 0.01, %v565_v45  ;;  %vm586_vm10 = vcmp.ge.f32.partialorder %v565_v45, 0.0 }
 0x14e   :  { %851 = vadd.xlane.f32.xlu0 %v835_v7  ;;  %v539_v10 = vpop.f32.mrf.mxu1 }
 0x14f   :  { %vm740_vm3 = vcmp.ge.f32.partialorder %v702_v9, 0.0  ;;  %v756_v11 = vmul.f32 0.01, %v702_v9  ;;  %v540_v14 = vadd.f32 %v1773_v56, %v539_v10  ;;  %v618_v62 = vsel %vm586_vm10, %v565_v45, %v602_v51 }
 0x151   :  { %v772_v13 = vsel %vm740_vm3, %v702_v9, %v756_v11  ;;  %v592_v20 = vmul.f32 0.01, %v540_v14  ;;  %vm576_vm4 = vcmp.ge.f32.partialorder %v540_v14, 0.0 }
 0x152   :  { %v566_v15 = vpop.f32.mrf.mxu3  ;;  %v1789_v16 = vadd.f32 %v772_v13, %v607_v12 }
 0x153   :  { %v608_v24 = vsel %vm576_vm4, %v540_v14, %v592_v20  ;;  %v567_v0 = vadd.f32 %v1773_v56, %v566_v15 }
 0x154   :  { %v704_v17 = vpop.f32.mrf.mxu2  ;;  %v836_v18 = vmul.f32 %v1789_v16, %v1789_v16  ;;  %v1343_v19 = vpack.c.bf16 %v1789_v16, %v1783_v5 }
 0x155   :  { %v705_v21 = vadd.f32 %v1779_v59, %v704_v17  ;;  %v603_v11 = vmul.f32 0.01, %v567_v0  ;;  %vm587_vm14 = vcmp.ge.f32.partialorder %v567_v0, 0.0 }
 0x156   :  { %853 = vadd.xlane.f32.xlu0 %v836_v18  ;;  %1344 = vst [vmem:[#allocation12] sm:$0xff] %v1343_v19   ;;  %v541_v22 = vpop.f32.mrf.mxu1 }
 0x157   :  { %vm741_vm5 = vcmp.ge.f32.partialorder %v705_v21, 0.0  ;;  %v757_v23 = vmul.f32 0.01, %v705_v21  ;;  %v542_v26 = vadd.f32 %v1773_v56, %v541_v22 }
 0x159   :  { %v773_v25 = vsel %vm741_vm5, %v705_v21, %v757_v23  ;;  %v593_v31 = vmul.f32 0.01, %v542_v26  ;;  %vm577_vm6 = vcmp.ge.f32.partialorder %v542_v26, 0.0  ;;  %v619_v21 = vsel %vm587_vm14, %v567_v0, %v603_v11 }
 0x15a   :  { %v1797_v27 = vpop.f32.mrf.mxu3  ;;  %v1799_v28 = vadd.f32 %v773_v25, %v608_v24 }
 0x15b   :  { %v609_v35 = vsel %vm577_vm6, %v542_v26, %v593_v31 }
 0x15c   :  { %v706_v29 = vpop.f32.mrf.mxu2  ;;  %v837_v30 = vmul.f32 %v1799_v28, %v1799_v28 }
 0x15d   :  { %v707_v32 = vadd.f32 %v1779_v59, %v706_v29 }
 0x15e   :  { %855 = vadd.xlane.f32.xlu1 %v837_v30  ;;  %v544_v33 = vpop.f32.mrf.mxu1 }
 0x15f   :  { %vm742_vm7 = vcmp.ge.f32.partialorder %v707_v32, 0.0  ;;  %v758_v34 = vmul.f32 0.01, %v707_v32  ;;  %v545_v37 = vadd.f32 %v1773_v56, %v544_v33 }
 0x161   :  { %v774_v36 = vsel %vm742_vm7, %v707_v32, %v758_v34  ;;  %v594_v43 = vmul.f32 0.01, %v545_v37  ;;  %vm578_vm8 = vcmp.ge.f32.partialorder %v545_v37, 0.0 }
 0x162   :  { %v1805_v38 = vpop.f32.mrf.mxu3  ;;  %v1807_v39 = vadd.f32 %v774_v36, %v609_v35 }
 0x163   :  { %v610_v48 = vsel %vm578_vm8, %v545_v37, %v594_v43 }
 0x164   :  { %v709_v40 = vpop.f32.mrf.mxu2  ;;  %v838_v41 = vmul.f32 %v1807_v39, %v1807_v39  ;;  %v1348_v42 = vpack.c.bf16 %v1807_v39, %v1799_v28 }
 0x165   :  { %v710_v44 = vadd.f32 %v1779_v59, %v709_v40  ;;  %v570_v40 = vadd.f32 %v1773_v56, %v1797_v27 }
 0x166   :  { %857 = vadd.xlane.f32.xlu1 %v838_v41  ;;  %1427 = vst [vmem:[#allocation12 + $0x8] sm:$0xff] %v1348_v42   ;;  %v546_v46 = vpop.f32.mrf.mxu1  ;;  %v572_v42 = vadd.f32 %v1773_v56, %v1805_v38 }
 0x167   :  { %vm743_vm9 = vcmp.ge.f32.partialorder %v710_v44, 0.0  ;;  %v759_v47 = vmul.f32 0.01, %v710_v44  ;;  %v547_v50 = vadd.f32 %v1773_v56, %v546_v46  ;;  %vm588_vm5 = vcmp.ge.f32.partialorder %v570_v40, 0.0 }
 0x168   :  { %v605_v27 = vmul.f32 0.01, %v572_v42  ;;  %vm589_vm6 = vcmp.ge.f32.partialorder %v572_v42, 0.0 }
 0x169   :  { %v775_v49 = vsel %vm743_vm9, %v710_v44, %v759_v47  ;;  %v595_v58 = vmul.f32 0.01, %v547_v50  ;;  %vm579_vm12 = vcmp.ge.f32.partialorder %v547_v50, 0.0 }
 0x16a   :  { %v729_v52 = vpop.f32.mrf.mxu3  ;;  %v1816_v53 = vadd.f32 %v775_v49, %v610_v48  ;;  %v604_v48 = vmul.f32 0.01, %v570_v40 }
 0x16b   :  { %v730_v54 = vadd.f32 %v1779_v59, %v729_v52  ;;  %v611_v4 = vsel %vm579_vm12, %v547_v50, %v595_v58 }
 0x16c   :  { %v711_v55 = vpop.f32.mrf.mxu2  ;;  %v839_v57 = vmul.f32 %v1816_v53, %v1816_v53 }
 0x16d   :  { %vm751_vm11 = vcmp.ge.f32.partialorder %v730_v54, 0.0  ;;  %v767_v60 = vmul.f32 0.01, %v730_v54  ;;  %v712_v61 = vadd.f32 %v1779_v59, %v711_v55 }
 0x16e   :  { %859 = vadd.xlane.f32.xlu2 %v839_v57  ;;  %v549_v63 = vpop.f32.mrf.mxu1 }
 0x16f   :  { %v783_v1 = vsel %vm751_vm11, %v730_v54, %v767_v60  ;;  %vm744_vm13 = vcmp.ge.f32.partialorder %v712_v61, 0.0  ;;  %v760_v2 = vmul.f32 0.01, %v712_v61  ;;  %v550_v7 = vadd.f32 %v1773_v56, %v549_v63 }
 0x170   :  { %v1823_v3 = vadd.f32 %v783_v1, %v618_v62  ;;  %v621_v63 = vsel %vm589_vm6, %v572_v42, %v605_v27 }
 0x171   :  { %v776_v6 = vsel %vm744_vm13, %v712_v61, %v760_v2  ;;  %v596_v17 = vmul.f32 0.01, %v550_v7  ;;  %vm580_vm0 = vcmp.ge.f32.partialorder %v550_v7, 0.0  ;;  %v620_v61 = vsel %vm588_vm5, %v570_v40, %v604_v48 }
 0x172   :  { %v731_v8 = vpop.f32.mrf.mxu3  ;;  %v847_v9 = vmul.f32 %v1823_v3, %v1823_v3  ;;  %v1828_v10 = vadd.f32 %v776_v6, %v611_v4 }
 0x173   :  { %v732_v12 = vadd.f32 %v1779_v59, %v731_v8  ;;  %v612_v25 = vsel %vm580_vm0, %v550_v7, %v596_v17 }
 0x174   :  { %875 = vadd.xlane.f32.xlu0 %v847_v9  ;;  %v714_v13 = vpop.f32.mrf.mxu2  ;;  %v840_v14 = vmul.f32 %v1828_v10, %v1828_v10  ;;  %v1353_v15 = vpack.c.bf16 %v1828_v10, %v1816_v53 }
 0x175   :  { %vm752_vm15 = vcmp.ge.f32.partialorder %v732_v12, 0.0  ;;  %v768_v18 = vmul.f32 0.01, %v732_v12  ;;  %v715_v19 = vadd.f32 %v1779_v59, %v714_v13 }
 0x176   :  { %861 = vadd.xlane.f32.xlu2 %v840_v14  ;;  %1428 = vst [vmem:[#allocation12 + $0x10] sm:$0xff] %v1353_v15   ;;  %v551_v20 = vpop.f32.mrf.mxu1 }
 0x177   :  { %v784_v22 = vsel %vm752_vm15, %v732_v12, %v768_v18  ;;  %vm745_vm1 = vcmp.ge.f32.partialorder %v715_v19, 0.0  ;;  %v761_v23 = vmul.f32 0.01, %v715_v19  ;;  %v552_v29 = vadd.f32 %v1773_v56, %v551_v20 }
 0x178   :  { %v1836_v24 = vadd.f32 %v784_v22, %v619_v21 }
 0x179   :  { %v777_v26 = vsel %vm745_vm1, %v715_v19, %v761_v23  ;;  %v597_v36 = vmul.f32 0.01, %v552_v29  ;;  %vm581_vm2 = vcmp.ge.f32.partialorder %v552_v29, 0.0 }
 0x17a   :  { %v734_v30 = vpop.f32.mrf.mxu3  ;;  %v1839_v31 = vadd.f32 %v777_v26, %v612_v25  ;;  %v1373_v32 = vpack.c.bf16 %v1836_v24, %v1823_v3  ;;  %v848_v27 = vmul.f32 %v1836_v24, %v1836_v24 }
 0x17b   :  { %v735_v33 = vadd.f32 %v1779_v59, %v734_v30  ;;  %v613_v45 = vsel %vm581_vm2, %v552_v29, %v597_v36 }
 0x17c   :  { %v716_v34 = vpop.f32.mrf.mxu2  ;;  %v841_v35 = vmul.f32 %v1839_v31, %v1839_v31  ;;  %1432 = vst [vmem:[#allocation12 + $0x30] sm:$0xff] %v1373_v32  }
 0x17d   :  { %v717_v37 = vadd.f32 %v1779_v59, %v716_v34  ;;  %v769_v44 = vmul.f32 0.01, %v735_v33  ;;  %vm753_vm4 = vcmp.ge.f32.partialorder %v735_v33, 0.0 }
 0x17e   :  { %863 = vadd.xlane.f32.xlu0 %v841_v35  ;;  %v554_v41 = vpop.f32.mrf.mxu1 }
 0x17f   :  { %vm746_vm3 = vcmp.ge.f32.partialorder %v717_v37, 0.0  ;;  %v762_v43 = vmul.f32 0.01, %v717_v37  ;;  %v555_v47 = vadd.f32 %v1773_v56, %v554_v41  ;;  %v785_v52 = vsel %vm753_vm4, %v735_v33, %v769_v44 }
 0x180   :  { %v1862_v4 = vadd.f32 %v785_v52, %v620_v61 }
 0x181   :  { %v778_v46 = vsel %vm746_vm3, %v717_v37, %v762_v43  ;;  %v598_v57 = vmul.f32 0.01, %v555_v47  ;;  %vm582_vm8 = vcmp.ge.f32.partialorder %v555_v47, 0.0 }
 0x182   :  { %v736_v49 = vpop.f32.mrf.mxu3  ;;  %v1852_v50 = vadd.f32 %v778_v46, %v613_v45 }
 0x183   :  { %v737_v51 = vadd.f32 %v1779_v59, %v736_v49  ;;  %v614_v6 = vsel %vm582_vm8, %v555_v47, %v598_v57 }
 0x184   :  { %v719_v54 = vpop.f32.mrf.mxu2  ;;  %v842_v38 = vmul.f32 %v1852_v50, %v1852_v50  ;;  %v1358_v55 = vpack.c.bf16 %v1852_v50, %v1839_v31 }
 0x185   :  { %vm754_vm7 = vcmp.ge.f32.partialorder %v737_v51, 0.0  ;;  %v770_v58 = vmul.f32 0.01, %v737_v51  ;;  %v720_v60 = vadd.f32 %v1779_v59, %v719_v54 }
 0x186   :  { %865 = vadd.xlane.f32.xlu1 %v842_v38  ;;  %1429 = vst [vmem:[#allocation12 + $0x18] sm:$0xff] %v1358_v55   ;;  %v556_v62 = vpop.f32.mrf.mxu1 }
 0x187   :  { %v786_v0 = vsel %vm754_vm7, %v737_v51, %v770_v58  ;;  %vm747_vm9 = vcmp.ge.f32.partialorder %v720_v60, 0.0  ;;  %v763_v1 = vmul.f32 0.01, %v720_v60  ;;  %v557_v8 = vadd.f32 %v1773_v56, %v556_v62 }
 0x188   :  { %v1860_v2 = vadd.f32 %v786_v0, %v621_v63 }
 0x189   :  { %v779_v7 = vsel %vm747_vm9, %v720_v60, %v763_v1  ;;  %v599_v14 = vmul.f32 0.01, %v557_v8  ;;  %vm583_vm10 = vcmp.ge.f32.partialorder %v557_v8, 0.0 }
 0x18a   :  { %v1865_v9 = vadd.f32 %v779_v7, %v614_v6  ;;  %v1378_v11 = vpack.c.bf16 %v1860_v2, %v1862_v4  ;;  %v850_v41 = vmul.f32 %v1860_v2, %v1860_v2 }
 0x18b   :  { %v615_v19 = vsel %vm583_vm10, %v557_v8, %v599_v14 }
 0x18c   :  { %v721_v12 = vpop.f32.mrf.mxu2  ;;  %v843_v13 = vmul.f32 %v1865_v9, %v1865_v9  ;;  %1433 = vst [vmem:[#allocation12 + $0x38] sm:$0xff] %v1378_v11  }
 0x18d   :  { %v722_v15 = vadd.f32 %v1779_v59, %v721_v12 }
 0x18e   :  { %867 = vadd.xlane.f32.xlu2 %v843_v13  ;;  %v559_v17 = vpop.f32.mrf.mxu1 }
 0x18f   :  { %vm748_vm11 = vcmp.ge.f32.partialorder %v722_v15, 0.0  ;;  %v764_v18 = vmul.f32 0.01, %v722_v15  ;;  %v560_v21 = vadd.f32 %v1773_v56, %v559_v17 }
 0x191   :  { %v780_v20 = vsel %vm748_vm11, %v722_v15, %v764_v18  ;;  %v600_v29 = vmul.f32 0.01, %v560_v21  ;;  %vm584_vm12 = vcmp.ge.f32.partialorder %v560_v21, 0.0 }
 0x192   :  { %v1873_v22 = vadd.f32 %v780_v20, %v615_v19 }
 0x193   :  { %v616_v34 = vsel %vm584_vm12, %v560_v21, %v600_v29 }
 0x194   :  { %v724_v23 = vpop.f32.mrf.mxu2  ;;  %v844_v25 = vmul.f32 %v1873_v22, %v1873_v22  ;;  %v1363_v26 = vpack.c.bf16 %v1873_v22, %v1865_v9 }
 0x195   :  { %v725_v30 = vadd.f32 %v1779_v59, %v724_v23 }
 0x196   :  { %869 = vadd.xlane.f32.xlu0 %v844_v25  ;;  %1430 = vst [vmem:[#allocation12 + $0x20] sm:$0xff] %v1363_v26   ;;  %v561_v32 = vpop.f32.mrf.mxu1 }
 0x197   :  { %vm749_vm13 = vcmp.ge.f32.partialorder %v725_v30, 0.0  ;;  %v765_v33 = vmul.f32 0.01, %v725_v30  ;;  %v562_v36 = vadd.f32 %v1773_v56, %v561_v32 }
 0x199   :  { %v781_v35 = vsel %vm749_vm13, %v725_v30, %v765_v33  ;;  %v601_v43 = vmul.f32 0.01, %v562_v36  ;;  %vm585_vm14 = vcmp.ge.f32.partialorder %v562_v36, 0.0 }
 0x19a   :  { %v1881_v37 = vadd.f32 %v781_v35, %v616_v34 }
 0x19b   :  { %v617_v46 = vsel %vm585_vm14, %v562_v36, %v601_v43 }
 0x19c   :  { %v726_v40 = vpop.f32.mrf.mxu2  ;;  %v845_v42 = vmul.f32 %v1881_v37, %v1881_v37 }
 0x19d   :  { %v727_v44 = vadd.f32 %v1779_v59, %v726_v40  ;;  %v849_v59 = vmul.f32 %v1862_v4, %v1862_v4 }
 0x19e   :  { %881 = vadd.xlane.f32.xlu0 %v850_v41  ;;  %871 = vadd.xlane.f32.xlu1 %v845_v42 }
 0x19f   :  { %vm750_vm15 = vcmp.ge.f32.partialorder %v727_v44, 0.0  ;;  %v766_v45 = vmul.f32 0.01, %v727_v44 }
 0x1a1   :  { %v782_v47 = vsel %vm750_vm15, %v727_v44, %v766_v45 }
 0x1a2   :  { %v1888_v56 = vadd.f32 %v782_v47, %v617_v46 }
 0x1a4   :  { %v846_v48 = vmul.f32 %v1888_v56, %v1888_v56  ;;  %v1368_v49 = vpack.c.bf16 %v1888_v56, %v1881_v37 }
 0x1a6   :  { %873 = vadd.xlane.f32.xlu2 %v846_v48  ;;  %1431 = vst [vmem:[#allocation12 + $0x28] sm:$0xff] %v1368_v49   ;;  %877 = vadd.xlane.f32.xlu1 %v848_v27 }
 0x1a7   :  { %1119 = dma.vmem_to_hbm [thread:$0]  %s1112_s6, 1024, %s1114_s11, [#allocation5], %s1687_s13, %s1687_s13, %s1688_s14  }
 0x1ae   :  { %879 = vadd.xlane.f32.xlu2 %v849_v59 }
 0x1c1   :  { %v852_v51 = vpop.xlane.xlu0 %851 }
 0x1c2   :  { %v883_v52 = vmax.f32 %v852_v51, 1e-24 }
 0x1c4   :  { %1476 = vrsqrt.f32 %v883_v52  ;;  %vm905_vm1 = vweird.f32 %v883_v52 }
 0x1c9   :  { %v854_v54 = vpop.xlane.xlu0 %853 }
 0x1ca   :  { %v1477_v38 = vpop.eup %1476  ;;  %v884_v55 = vmax.f32 %v854_v54, 1e-24 }
 0x1cb   :  { %v900_v57 = vmul.f32 %v1477_v38, %v883_v52  ;;  %vm906_vm0 = vweird.f32 %v1477_v38 }
 0x1cc   :  { %1478 = vrsqrt.f32 %v884_v55  ;;  %vm907_vm3 = vmor %vm905_vm1, %vm906_vm0  ;;  %vm915_vm4 = vweird.f32 %v884_v55 }
 0x1cd   :  { %v901_v58 = vmul.f32 %v1477_v38, %v900_v57 }
 0x1cf   :  { %v902_v60 = vmul.f32 0.5, %v901_v58 }
 0x1d1   :  { %v856_v61 = vpop.xlane.xlu1 %855  ;;  %v903_v0 = vsub.f32 1.5, %v902_v60 }
 0x1d2   :  { %v1479_v62 = vpop.eup %1478  ;;  %v885_v63 = vmax.f32 %v856_v61, 1e-24 }
 0x1d3   :  { %v910_v1 = vmul.f32 %v1479_v62, %v884_v55  ;;  %v904_v7 = vmul.f32 %v1477_v38, %v903_v0  ;;  %vm916_vm2 = vweird.f32 %v1479_v62 }
 0x1d4   :  { %1480 = vrsqrt.f32 %v885_v63  ;;  %vm917_vm5 = vmor %vm915_vm4, %vm916_vm2  ;;  %vm925_vm7 = vweird.f32 %v885_v63 }
 0x1d5   :  { %v911_v6 = vmul.f32 %v1479_v62, %v910_v1  ;;  %v908_v15 = vsel %vm907_vm3, %v1477_v38, %v904_v7 }
 0x1d6   :  { %v1059_v21 = vmul.f32 %v908_v15, %v1783_v5 }
 0x1d7   :  { %v912_v8 = vmul.f32 0.5, %v911_v6 }
 0x1d9   :  { %v913_v11 = vsub.f32 1.5, %v912_v8  ;;  %v858_v12 = vpop.xlane.xlu1 %857 }
 0x1da   :  { %v1481_v13 = vpop.eup %1480  ;;  %v886_v14 = vmax.f32 %v858_v12, 1e-24 }
 0x1db   :  { %v914_v17 = vmul.f32 %v1479_v62, %v913_v11  ;;  %v920_v18 = vmul.f32 %v1481_v13, %v885_v63  ;;  %vm926_vm6 = vweird.f32 %v1481_v13 }
 0x1dc   :  { %1482 = vrsqrt.f32 %v886_v14  ;;  %vm927_vm9 = vmor %vm925_vm7, %vm926_vm6  ;;  %vm935_vm10 = vweird.f32 %v886_v14 }
 0x1dd   :  { %v918_v19 = vsel %vm917_vm5, %v1479_v62, %v914_v17  ;;  %v921_v20 = vmul.f32 %v1481_v13, %v920_v18 }
 0x1de   :  { %v1060_v23 = vmul.f32 %v918_v19, %v1789_v16 }
 0x1df   :  { %v922_v25 = vmul.f32 0.5, %v921_v20 }
 0x1e0   :  { %v1383_v26 = vpack.c.bf16 %v1060_v23, %v1059_v21 }
 0x1e1   :  { %v860_v29 = vpop.xlane.xlu2 %859  ;;  %v923_v33 = vsub.f32 1.5, %v922_v25 }
 0x1e2   :  { %v1483_v30 = vpop.eup %1482  ;;  %1384 = vst [vmem:[#allocation13] sm:$0xff] %v1383_v26   ;;  %v887_v32 = vmax.f32 %v860_v29, 1e-24 }
 0x1e3   :  { %v930_v34 = vmul.f32 %v1483_v30, %v886_v14  ;;  %v924_v36 = vmul.f32 %v1481_v13, %v923_v33  ;;  %vm936_vm8 = vweird.f32 %v1483_v30 }
 0x1e4   :  { %1484 = vrsqrt.f32 %v887_v32  ;;  %vm937_vm11 = vmor %vm935_vm10, %vm936_vm8  ;;  %vm945_vm13 = vweird.f32 %v887_v32 }
 0x1e5   :  { %v931_v35 = vmul.f32 %v1483_v30, %v930_v34  ;;  %v928_v44 = vsel %vm927_vm9, %v1481_v13, %v924_v36 }
 0x1e6   :  { %v1061_v49 = vmul.f32 %v928_v44, %v1799_v28 }
 0x1e7   :  { %v932_v40 = vmul.f32 0.5, %v931_v35  ;;  %v876_v42 = vpop.xlane.xlu0 %875 }
 0x1e8   :  { %v1910_v26 = vmax.f32 %v876_v42, 1e-24 }
 0x1e9   :  { %v933_v41 = vsub.f32 1.5, %v932_v40  ;;  %v862_v5 = vpop.xlane.xlu2 %861 }
 0x1ea   :  { %v1485_v43 = vpop.eup %1484  ;;  %v888_v16 = vmax.f32 %v862_v5, 1e-24 }
 0x1eb   :  { %v934_v45 = vmul.f32 %v1483_v30, %v933_v41  ;;  %v940_v46 = vmul.f32 %v1485_v43, %v887_v32  ;;  %vm946_vm12 = vweird.f32 %v1485_v43 }
 0x1ec   :  { %1486 = vrsqrt.f32 %v888_v16  ;;  %vm947_vm15 = vmor %vm945_vm13, %vm946_vm12  ;;  %vm955_vm0 = vweird.f32 %v888_v16 }
 0x1ed   :  { %v938_v47 = vsel %vm937_vm11, %v1483_v30, %v934_v45  ;;  %v941_v48 = vmul.f32 %v1485_v43, %v940_v46 }
 0x1ee   :  { %v1062_v27 = vmul.f32 %v938_v47, %v1807_v39 }
 0x1ef   :  { %v942_v59 = vmul.f32 0.5, %v941_v48 }
 0x1f0   :  { %v1388_v51 = vpack.c.bf16 %v1062_v27, %v1061_v49 }
 0x1f1   :  { %v864_v52 = vpop.xlane.xlu0 %863  ;;  %v943_v55 = vsub.f32 1.5, %v942_v59 }
 0x1f2   :  { %v1487_v54 = vpop.eup %1486  ;;  %1434 = vst [vmem:[#allocation13 + $0x8] sm:$0xff] %v1388_v51   ;;  %v889_v38 = vmax.f32 %v864_v52, 1e-24 }
 0x1f3   :  { %v950_v57 = vmul.f32 %v1487_v54, %v888_v16  ;;  %v944_v60 = vmul.f32 %v1485_v43, %v943_v55  ;;  %vm956_vm14 = vweird.f32 %v1487_v54 }
 0x1f4   :  { %1488 = vrsqrt.f32 %v889_v38  ;;  %vm957_vm1 = vmor %vm955_vm0, %vm956_vm14  ;;  %vm965_vm3 = vweird.f32 %v889_v38  ;;  %vm1025_vm0 = vweird.f32 %v1910_v26 }
 0x1f5   :  { %v951_v58 = vmul.f32 %v1487_v54, %v950_v57  ;;  %v948_v0 = vsel %vm947_vm15, %v1485_v43, %v944_v60 }
 0x1f6   :  { %v1063_v11 = vmul.f32 %v948_v0, %v1816_v53 }
 0x1f7   :  { %v952_v61 = vmul.f32 0.5, %v951_v58 }
 0x1f9   :  { %v953_v62 = vsub.f32 1.5, %v952_v61  ;;  %v866_v63 = vpop.xlane.xlu1 %865 }
 0x1fa   :  { %v1489_v28 = vpop.eup %1488  ;;  %v890_v39 = vmax.f32 %v866_v63, 1e-24 }
 0x1fb   :  { %v954_v1 = vmul.f32 %v1487_v54, %v953_v62  ;;  %v960_v6 = vmul.f32 %v1489_v28, %v889_v38  ;;  %vm966_vm2 = vweird.f32 %v1489_v28 }
 0x1fc   :  { %1490 = vrsqrt.f32 %v890_v39  ;;  %vm967_vm5 = vmor %vm965_vm3, %vm966_vm2  ;;  %vm975_vm6 = vweird.f32 %v890_v39 }
 0x1fd   :  { %v958_v7 = vsel %vm957_vm1, %v1487_v54, %v954_v1  ;;  %v961_v8 = vmul.f32 %v1489_v28, %v960_v6 }
 0x1fe   :  { %v1064_v12 = vmul.f32 %v958_v7, %v1828_v10 }
 0x1ff   :  { %v962_v13 = vmul.f32 0.5, %v961_v8 }
 0x200   :  { %v1393_v14 = vpack.c.bf16 %v1064_v12, %v1063_v11 }
 0x201   :  { %v868_v15 = vpop.xlane.xlu2 %867  ;;  %v963_v19 = vsub.f32 1.5, %v962_v13 }
 0x202   :  { %v1491_v17 = vpop.eup %1490  ;;  %1435 = vst [vmem:[#allocation13 + $0x10] sm:$0xff] %v1393_v14   ;;  %v891_v18 = vmax.f32 %v868_v15, 1e-24 }
 0x203   :  { %v970_v20 = vmul.f32 %v1491_v17, %v890_v39  ;;  %v964_v23 = vmul.f32 %v1489_v28, %v963_v19  ;;  %vm976_vm4 = vweird.f32 %v1491_v17 }
 0x204   :  { %1492 = vrsqrt.f32 %v891_v18  ;;  %vm977_vm7 = vmor %vm975_vm6, %vm976_vm4  ;;  %vm985_vm9 = vweird.f32 %v891_v18 }
 0x205   :  { %v971_v21 = vmul.f32 %v1491_v17, %v970_v20  ;;  %v968_v32 = vsel %vm967_vm5, %v1489_v28, %v964_v23 }
 0x206   :  { %v1065_v40 = vmul.f32 %v968_v32, %v1839_v31 }
 0x207   :  { %v972_v25 = vmul.f32 0.5, %v971_v21 }
 0x209   :  { %v973_v29 = vsub.f32 1.5, %v972_v25  ;;  %v870_v53 = vpop.xlane.xlu0 %869 }
 0x20a   :  { %v1493_v10 = vpop.eup %1492  ;;  %v892_v30 = vmax.f32 %v870_v53, 1e-24 }
 0x20b   :  { %v974_v33 = vmul.f32 %v1491_v17, %v973_v29  ;;  %v980_v34 = vmul.f32 %v1493_v10, %v891_v18  ;;  %vm986_vm8 = vweird.f32 %v1493_v10 }
 0x20c   :  { %1494 = vrsqrt.f32 %v892_v30  ;;  %vm987_vm11 = vmor %vm985_vm9, %vm986_vm8  ;;  %vm995_vm12 = vweird.f32 %v892_v30 }
 0x20d   :  { %1496 = vrsqrt.f32 %v1910_v26  ;;  %v978_v35 = vsel %vm977_vm7, %v1491_v17, %v974_v33  ;;  %v981_v36 = vmul.f32 %v1493_v10, %v980_v34 }
 0x20e   :  { %v1066_v41 = vmul.f32 %v978_v35, %v1852_v50 }
 0x20f   :  { %v982_v42 = vmul.f32 0.5, %v981_v36 }
 0x210   :  { %v1398_v5 = vpack.c.bf16 %v1066_v41, %v1065_v40 }
 0x211   :  { %v882_v43 = vpop.xlane.xlu0 %881  ;;  %v872_v16 = vpop.xlane.xlu1 %871  ;;  %v983_v48 = vsub.f32 1.5, %v982_v42 }
 0x212   :  { %v1495_v44 = vpop.eup %1494  ;;  %1436 = vst [vmem:[#allocation13 + $0x18] sm:$0xff] %v1398_v5   ;;  %v1915_v45 = vmax.f32 %v882_v43, 1e-24  ;;  %v1917_v46 = vmax.f32 %v872_v16, 1e-24 }
 0x213   :  { %v1919_v47 = vpop.eup %1496  ;;  %v990_v49 = vmul.f32 %v1495_v44, %v892_v30  ;;  %v984_v50 = vmul.f32 %v1493_v10, %v983_v48  ;;  %vm996_vm10 = vweird.f32 %v1495_v44 }
 0x214   :  { %1498 = vrsqrt.f32 %v1917_v46  ;;  %v1020_v31 = vmul.f32 %v1919_v47, %v1910_v26  ;;  %vm997_vm13 = vmor %vm995_vm12, %vm996_vm10  ;;  %vm1026_vm14 = vweird.f32 %v1919_v47  ;;  %vm1005_vm2 = vweird.f32 %v1917_v46 }
 0x215   :  { %v991_v27 = vmul.f32 %v1495_v44, %v990_v49  ;;  %1500 = vrsqrt.f32 %v1915_v45  ;;  %v988_v60 = vsel %vm987_vm11, %v1493_v10, %v984_v50  ;;  %vm1937_vm1 = vmor %vm1025_vm0, %vm1026_vm14  ;;  %vm1055_vm11 = vweird.f32 %v1915_v45 }
 0x216   :  { %v1021_v38 = vmul.f32 %v1919_v47, %v1020_v31  ;;  %v1067_v0 = vmul.f32 %v988_v60, %v1865_v9 }
 0x217   :  { %v992_v59 = vmul.f32 0.5, %v991_v27 }
 0x218   :  { %v1022_v39 = vmul.f32 0.5, %v1021_v38 }
 0x219   :  { %v993_v51 = vsub.f32 1.5, %v992_v59  ;;  %v874_v52 = vpop.xlane.xlu2 %873  ;;  %v878_v54 = vpop.xlane.xlu1 %877 }
 0x21a   :  { %v894_v55 = vmax.f32 %v874_v52, 1e-24  ;;  %v896_v57 = vmax.f32 %v878_v54, 1e-24  ;;  %v1499_v58 = vpop.eup %1498  ;;  %v1023_v14 = vsub.f32 1.5, %v1022_v39 }
 0x21b   :  { %v994_v61 = vmul.f32 %v1495_v44, %v993_v51  ;;  %v1926_v62 = vpop.eup %1500  ;;  %v1000_v63 = vmul.f32 %v1499_v58, %v1917_v46  ;;  %vm1006_vm15 = vweird.f32 %v1499_v58 }
 0x21c   :  { %1502 = vrsqrt.f32 %v894_v55  ;;  %v1050_v7 = vmul.f32 %v1926_v62, %v1915_v45  ;;  %vm1007_vm4 = vmor %vm1005_vm2, %vm1006_vm15  ;;  %vm1015_vm5 = vweird.f32 %v894_v55  ;;  %vm1035_vm8 = vweird.f32 %v896_v57 }
 0x21d   :  { %v998_v28 = vsel %vm997_vm13, %v1495_v44, %v994_v61  ;;  %1504 = vrsqrt.f32 %v896_v57  ;;  %v1001_v6 = vmul.f32 %v1499_v58, %v1000_v63  ;;  %vm1056_vm10 = vweird.f32 %v1926_v62 }
 0x21e   :  { %v1068_v1 = vmul.f32 %v998_v28, %v1873_v22  ;;  %v1051_v18 = vmul.f32 %v1926_v62, %v1050_v7  ;;  %v1024_v22 = vmul.f32 %v1919_v47, %v1023_v14  ;;  %vm1057_vm13 = vmor %vm1055_vm11, %vm1056_vm10 }
 0x21f   :  { %v1002_v11 = vmul.f32 0.5, %v1001_v6 }
 0x220   :  { %v1403_v8 = vpack.c.bf16 %v1068_v1, %v1067_v0  ;;  %v1052_v25 = vmul.f32 0.5, %v1051_v18  ;;  %v1028_v34 = vsel %vm1937_vm1, %v1919_v47, %v1024_v22 }
 0x221   :  { %v880_v12 = vpop.xlane.xlu2 %879  ;;  %v1003_v19 = vsub.f32 1.5, %v1002_v11  ;;  %v1071_v16 = vmul.f32 %v1028_v34, %v1823_v3 }
 0x222   :  { %v1503_v13 = vpop.eup %1502  ;;  %1437 = vst [vmem:[#allocation13 + $0x20] sm:$0xff] %v1403_v8   ;;  %v897_v15 = vmax.f32 %v880_v12, 1e-24  ;;  %v1053_v36 = vsub.f32 1.5, %v1052_v25 }
 0x223   :  { %v1505_v17 = vpop.eup %1504  ;;  %v1010_v20 = vmul.f32 %v1503_v13, %v894_v55  ;;  %v1004_v29 = vmul.f32 %v1499_v58, %v1003_v19  ;;  %vm1016_vm3 = vweird.f32 %v1503_v13 }
 0x224   :  { %v1030_v21 = vmul.f32 %v1505_v17, %v896_v57  ;;  %1506 = vrsqrt.f32 %v897_v15  ;;  %vm1036_vm6 = vweird.f32 %v1505_v17  ;;  %vm1017_vm7 = vmor %vm1015_vm5, %vm1016_vm3  ;;  %v1054_v48 = vmul.f32 %v1926_v62, %v1053_v36 }
 0x225   :  { %v1011_v9 = vmul.f32 %v1503_v13, %v1010_v20  ;;  %v1008_v26 = vsel %vm1007_vm4, %v1499_v58, %v1004_v29  ;;  %vm1037_vm9 = vmor %vm1035_vm8, %vm1036_vm6  ;;  %vm1045_vm14 = vweird.f32 %v897_v15 }
 0x226   :  { %v1031_v23 = vmul.f32 %v1505_v17, %v1030_v21  ;;  %v1069_v44 = vmul.f32 %v1008_v26, %v1881_v37  ;;  %v1058_v3 = vsel %vm1057_vm13, %v1926_v62, %v1054_v48 }
 0x227   :  { %v1012_v53 = vmul.f32 0.5, %v1011_v9 }
 0x228   :  { %v1032_v10 = vmul.f32 0.5, %v1031_v23 }
 0x229   :  { %v1013_v32 = vsub.f32 1.5, %v1012_v53 }
 0x22a   :  { %v1507_v33 = vpop.eup %1506  ;;  %v1033_v35 = vsub.f32 1.5, %v1032_v10 }
 0x22b   :  { %v1014_v40 = vmul.f32 %v1503_v13, %v1013_v32  ;;  %v1040_v41 = vmul.f32 %v1507_v33, %v897_v15  ;;  %vm1046_vm12 = vweird.f32 %v1507_v33 }
 0x22c   :  { %v1034_v42 = vmul.f32 %v1505_v17, %v1033_v35  ;;  %vm1047_vm15 = vmor %vm1045_vm14, %vm1046_vm12 }
 0x22d   :  { %v1018_v5 = vsel %vm1017_vm7, %v1503_v13, %v1014_v40  ;;  %v1041_v43 = vmul.f32 %v1507_v33, %v1040_v41 }
 0x22e   :  { %v1070_v46 = vmul.f32 %v1018_v5, %v1888_v56  ;;  %v1038_v47 = vsel %vm1037_vm9, %v1505_v17, %v1034_v42 }
 0x22f   :  { %v1072_v49 = vmul.f32 %v1038_v47, %v1836_v24  ;;  %v1042_v27 = vmul.f32 0.5, %v1041_v43  ;;  %v1074_v24 = vmul.f32 %v1058_v3, %v1860_v2 }
 0x230   :  { %v1408_v31 = vpack.c.bf16 %v1070_v46, %v1069_v44 }
 0x231   :  { %v1413_v50 = vpack.c.bf16 %v1072_v49, %v1071_v16  ;;  %v1043_v59 = vsub.f32 1.5, %v1042_v27 }
 0x232   :  { %1438 = vst [vmem:[#allocation13 + $0x28] sm:$0xff] %v1408_v31  }
 0x233   :  { %1439 = vst [vmem:[#allocation13 + $0x30] sm:$0xff] %v1413_v50   ;;  %v1044_v37 = vmul.f32 %v1507_v33, %v1043_v59 }
 0x235   :  { %v1048_v56 = vsel %vm1047_vm15, %v1507_v33, %v1044_v37 }
 0x236   :  { %v1073_v45 = vmul.f32 %v1048_v56, %v1862_v4 }
 0x238   :  { %v1418_v51 = vpack.c.bf16 %v1074_v24, %v1073_v45 }
 0x23a   :  { %1440 = vst [vmem:[#allocation13 + $0x38] sm:$0xff] %v1418_v51  }
 0x23b   :  { %1132 = dma.vmem_to_hbm [thread:$0]  %s1125_s12, 1024, %s1127_s17, [#allocation14], %s1687_s13, %s1687_s13, %s1688_s14  }
 0x23c   :  { %1682 = dma.done.wait [#allocation5], 1024  }
 0x23d   :  { %1683 = vsyncadd [#allocation5], 4294966272 }
 0x23e   :  { %1684 = dma.done.wait [#allocation14], 1024  }
 0x23f   :  { %1685 = vsyncadd [#allocation14], 4294966272 }
 0x240   :  { %1141 = vsyncpa [#allocation4], 1 }
 0x241   :  { %1142 = vsyncpa [#allocation7], 1 }
 0x242   :  { %1143 = vsyncpa [#allocation10], 1 }
 0x243   :  { %1144 = vsyncpa [#allocation5], 1 }
 0x244   :  { %1145 = vsyncpa [#allocation14], 1 }

</bundles_post_ra>
